<compile_context>
chip_gen: v7x
topology: tpu7x:2x2x1
jax: 0.10.0
libtpu: 0.0.40
codegen_flags: <defaults>
</compile_context>

<pallas_src>
import functools

import jax
import jax.numpy as jnp
from jax.experimental import pallas as pl
from jax.experimental.pallas import tpu as pltpu


def _round_up(x, m):
    return ((x + m - 1) // m) * m


def _vmem_limit_bytes():
    """Per-generation VMEM budget with headroom (v5e/v6e 128 MiB, v7x 64 MiB)."""
    try:
        cap = pltpu.get_tpu_info().vmem_capacity_bytes
        return int(cap * 3 // 4)
    except Exception:
        return 64 * 1024 * 1024


def _rnn_kernel(*refs, seq_len, num_layers):
    """One batch tile fully resident; everything carried in values.

    refs (num_layers > 1):
      x_ref    : (S, TB, Ip)
      w_ih0_ref: (Ip, Hp)           layer-0 input weights, pre-transposed (K,N)
      w_ihr_ref: (L-1, Hp, Hp)      input weights for layers 1..L-1 (K,N)
      w_hh_ref : (L, Hp, Hp)        recurrent weights (K,N)
      b_ref    : (L, 1, Hp)         b_ih + b_hh, combined
      w_fc_ref : (Hp, Op)           fc weight, pre-transposed
      b_fc_ref : (1, Op)
      out_ref  : (TB, Op)
    (num_layers == 1: same, without w_ihr_ref)
    """
    if num_layers > 1:
        (x_ref, w_ih0_ref, w_ihr_ref, w_hh_ref, b_ref,
         w_fc_ref, b_fc_ref, out_ref) = refs
    else:
        (x_ref, w_ih0_ref, w_hh_ref, b_ref,
         w_fc_ref, b_fc_ref, out_ref) = refs
        w_ihr_ref = None

    S = seq_len
    TB = x_ref.shape[1]
    Ip = x_ref.shape[2]
    Hp = w_hh_ref.shape[-1]

    def mm(a, w):  # (M, K) @ (K, N) on the MXU, f32 accumulation
        return jnp.dot(a, w, preferred_element_type=jnp.float32)

    seq = None   # per-step layer outputs (values), input to the next layer
    h = None
    for l in range(num_layers):
        # ---- whole-sequence input projection: one big GEMM, bias folded. ----
        if l == 0:
            inp_flat = x_ref[...].reshape(S * TB, Ip)
            w_in = w_ih0_ref[...]
        else:
            inp_flat = jnp.concatenate(seq, axis=0)          # (S*TB, Hp)
            w_in = w_ihr_ref[l - 1]
        proj = (mm(inp_flat, w_in) + b_ref[l]).reshape(S, TB, Hp)

        # ---- serial recurrence, kept entirely in registers. ----
        w_hh = w_hh_ref[l]
        is_top = (l == num_layers - 1)
        seq_next = []

        # h0 == 0  =>  step 0 needs no recurrent matmul.
        h = jnp.maximum(proj[0], 0.0)
        if not is_top:
            seq_next.append(h)
        # TODO(synk): replace full unroll with lax.fori_loop(unroll=4..8) over
        # a time-chunked scratch once S grows beyond ~16.
        for t in range(1, S):
            h = jnp.maximum(mm(h, w_hh) + proj[t], 0.0)
            if not is_top:
                seq_next.append(h)
        seq = seq_next

    # ---- fc on last time step of top layer (carried h, no reload). ----
    out_ref[...] = mm(h, w_fc_ref[...]) + b_fc_ref[...]


def prepare_params(params, *, num_layers):
    """One-time weight prep: transpose to (K, N), fold b_ih+b_hh, zero-pad to
    lane/sublane-aligned shapes.  Padded units stay exactly 0 through ReLU, so
    results in the un-padded slice match the un-padded computation."""
    w_ih0, w_ihr, w_hh, b_ih, b_hh, w_fc, b_fc = params
    I = w_ih0.shape[1]
    H = w_hh.shape[-1]
    O = w_fc.shape[0]
    Ip = _round_up(I, 128)
    Hp = _round_up(H, 128)
    Op = _round_up(O, 128)

    def pad(a, shape):
        return jnp.pad(a, [(0, s - d) for d, s in zip(a.shape, shape)])

    w_ih0_t = pad(jnp.transpose(w_ih0).astype(jnp.float32), (Ip, Hp))
    w_hh_t = pad(jnp.transpose(w_hh, (0, 2, 1)).astype(jnp.float32),
                 (num_layers, Hp, Hp))
    b_comb = pad((b_ih + b_hh).astype(jnp.float32), (num_layers, 1, Hp))
    w_fc_t = pad(jnp.transpose(w_fc).astype(jnp.float32), (Hp, Op))
    b_fc_p = pad(b_fc.astype(jnp.float32), (1, Op))

    weights = [w_ih0_t]
    if num_layers > 1:
        w_ihr_t = pad(
            jnp.transpose(w_ihr[:num_layers - 1], (0, 2, 1)).astype(jnp.float32),
            (num_layers - 1, Hp, Hp))
        weights.append(w_ihr_t)
    weights += [w_hh_t, b_comb, w_fc_t, b_fc_p]

    dims = (I, H, O, Ip, Hp, Op)
    return tuple(weights), dims


@functools.partial(jax.jit, static_argnames=("dims", "num_layers"))
def recurrent_forward(x, weights, dims, *, num_layers):
    """x: (seq, batch, in_dim) float32 -> (batch, out_dim) float32."""
    I, H, O, Ip, Hp, Op = dims
    S, B, _ = x.shape

    # Batch tiling: one sublane-aligned tile per grid step ("parallel" axis so
    # v7x's two TensorCores split larger batches; grid of 1 at small batch).
    if B <= 128:
        Bp = _round_up(B, 8)
        TB = Bp
    else:
        Bp = _round_up(B, 128)
        TB = 128
    n_tiles = Bp // TB

    x_p = jnp.pad(x.astype(jnp.float32), ((0, 0), (0, Bp - B), (0, Ip - I)))

    in_specs = [pl.BlockSpec((S, TB, Ip), lambda b: (0, b, 0)),
                pl.BlockSpec((Ip, Hp), lambda b: (0, 0))]
    if num_layers > 1:
        in_specs.append(pl.BlockSpec((num_layers - 1, Hp, Hp),
                                     lambda b: (0, 0, 0)))
    in_specs += [pl.BlockSpec((num_layers, Hp, Hp), lambda b: (0, 0, 0)),
                 pl.BlockSpec((num_layers, 1, Hp), lambda b: (0, 0, 0)),
                 pl.BlockSpec((Hp, Op), lambda b: (0, 0)),
                 pl.BlockSpec((1, Op), lambda b: (0, 0))]
    out_specs = pl.BlockSpec((TB, Op), lambda b: (b, 0))

    flops = (2 * S * Bp * Ip * Hp                              # layer-0 proj
             + 2 * S * Bp * Hp * Hp * (num_layers - 1)         # other projs
             + 2 * max(S - 1, 0) * Bp * Hp * Hp * num_layers   # recurrence
             + 2 * Bp * Hp * Op)                               # fc
    bytes_accessed = 4 * (S * Bp * Ip + Ip * Hp
                          + (num_layers - 1) * Hp * Hp + num_layers * Hp * Hp
                          + num_layers * Hp + Hp * Op + Op + Bp * Op)

    kernel = functools.partial(_rnn_kernel, seq_len=S, num_layers=num_layers)

    out_p = pl.pallas_call(
        kernel,
        out_shape=jax.ShapeDtypeStruct((Bp, Op), jnp.float32),
        grid=(n_tiles,),
        in_specs=in_specs,
        out_specs=out_specs,
        compiler_params=pltpu.CompilerParams(
            dimension_semantics=("parallel",),
            vmem_limit_bytes=_vmem_limit_bytes()),
        cost_estimate=pl.CostEstimate(flops=int(flops), transcendentals=0,
                                      bytes_accessed=int(bytes_accessed)),
    )(x_p, *weights)

    return out_p[:B, :O]


def init_params(key, in_dim, hidden_dim, layer_dim, out_dim):
    """Deterministic PyTorch-style init: U(-1/sqrt(H), 1/sqrt(H))."""
    k = 1.0 / jnp.sqrt(jnp.float32(hidden_dim))
    keys = jax.random.split(key, 7)
    u = lambda kk, shape: jax.random.uniform(kk, shape, jnp.float32, -k, k)

    w_ih0 = u(keys[0], (hidden_dim, in_dim))
    n_rest = max(layer_dim - 1, 1)
    w_ihr = u(keys[1], (n_rest, hidden_dim, hidden_dim))
    w_hh = u(keys[2], (layer_dim, hidden_dim, hidden_dim))
    b_ih = u(keys[3], (layer_dim, 1, hidden_dim))
    b_hh = u(keys[4], (layer_dim, 1, hidden_dim))
    w_fc = u(keys[5], (out_dim, hidden_dim))
    b_fc = u(keys[6], (1, out_dim))
    return (w_ih0, w_ihr, w_hh, b_ih, b_hh, w_fc, b_fc)


def reference_forward(x, params, *, num_layers):
    """Pure-JAX reference replicating PyTorch nn.RNN(relu) + Linear."""
    w_ih0, w_ihr, w_hh, b_ih, b_hh, w_fc, b_fc = params
    S, B, _ = x.shape
    H = w_hh.shape[-1]
    inp = x
    for l in range(num_layers):
        w_ih = w_ih0 if l == 0 else w_ihr[l - 1]
        h = jnp.zeros((B, H), jnp.float32)
        outs = []
        for t in range(S):
            h = jax.nn.relu(inp[t] @ w_ih.T + h @ w_hh[l].T
                            + b_ih[l, 0] + b_hh[l, 0])
            outs.append(h)
        inp = jnp.stack(outs, axis=0)
    return inp[-1] @ w_fc.T + b_fc[0]


if __name__ == "__main__":
    # Small shapes implied by the module's forward: x is (seq, batch, in_dim).
    SEQ, BATCH, IN_DIM = 8, 2, 16
    HIDDEN, LAYERS, OUT_DIM = 32, 2, 8

    key = jax.random.PRNGKey(0)
    kx, kp = jax.random.split(key)
    x = jax.random.normal(kx, (SEQ, BATCH, IN_DIM), jnp.float32)
    params = init_params(kp, IN_DIM, HIDDEN, LAYERS, OUT_DIM)

    # One-time weight preparation (cached across forward calls).
    weights, dims = prepare_params(params, num_layers=LAYERS)
    weights = jax.tree_util.tree_map(jax.block_until_ready, weights)

    out = recurrent_forward(x, weights, dims, num_layers=LAYERS)
    out = jax.block_until_ready(out)

    ref = reference_forward(x, params, num_layers=LAYERS)
    assert out.shape == (BATCH, OUT_DIM)
    assert jnp.allclose(out, ref, atol=1e-5, rtol=1e-5), (
        f"max abs err {jnp.max(jnp.abs(out - ref))}")

    print("KERNEL_OK")
</pallas_src>

<mosaic_0001>
module attributes {stable_mosaic.version = 11 : i64} {
  func.func @_rnn_kernel(%arg0: i32, %arg1: memref<8x8x128xf32, #tpu.memory_space<vmem>>, %arg2: memref<128x128xf32, #tpu.memory_space<vmem>>, %arg3: memref<1x128x128xf32, #tpu.memory_space<vmem>>, %arg4: memref<2x128x128xf32, #tpu.memory_space<vmem>>, %arg5: memref<2x1x128xf32, #tpu.memory_space<vmem>>, %arg6: memref<128x128xf32, #tpu.memory_space<vmem>>, %arg7: memref<1x128xf32, #tpu.memory_space<vmem>>, %arg8: memref<8x128xf32, #tpu.memory_space<vmem>>) attributes {dimension_semantics = [#tpu.dimension_semantics<parallel>], iteration_bounds = array<i64: 1>, scalar_prefetch = 0 : i64, scratch_operands = 0 : i64, tpu.core_type = #tpu.core_type<tc>, window_params = [{transform_indices = @transform_0, window_bounds = array<i64: 8, 8, 128>}, {pipeline_mode = #tpu.pipeline_mode<synchronous>, transform_indices = @transform_1, window_bounds = array<i64: 128, 128>}, {pipeline_mode = #tpu.pipeline_mode<synchronous>, transform_indices = @transform_2, window_bounds = array<i64: 1, 128, 128>}, {pipeline_mode = #tpu.pipeline_mode<synchronous>, transform_indices = @transform_3, window_bounds = array<i64: 2, 128, 128>}, {pipeline_mode = #tpu.pipeline_mode<synchronous>, transform_indices = @transform_4, window_bounds = array<i64: 2, 1, 128>}, {pipeline_mode = #tpu.pipeline_mode<synchronous>, transform_indices = @transform_5, window_bounds = array<i64: 128, 128>}, {pipeline_mode = #tpu.pipeline_mode<synchronous>, transform_indices = @transform_6, window_bounds = array<i64: 1, 128>}, {transform_indices = @transform_7, window_bounds = array<i64: 8, 128>}]} {
    %c0 = arith.constant 0 : index
    %c0_0 = arith.constant 0 : index
    %c0_1 = arith.constant 0 : index
    %0 = vector.load %arg1[%c0, %c0_0, %c0_1] : memref<8x8x128xf32, #tpu.memory_space<vmem>>, vector<8x8x128xf32>
    %1 = vector.shape_cast %0 : vector<8x8x128xf32> to vector<64x128xf32>
    %c0_2 = arith.constant 0 : index
    %c0_3 = arith.constant 0 : index
    %2 = vector.load %arg2[%c0_2, %c0_3] : memref<128x128xf32, #tpu.memory_space<vmem>>, vector<128x128xf32>
    %cst = arith.constant dense<0.000000e+00> : vector<64x128xf32>
    %3 = tpu.matmul %1, %2, %cst {dimension_numbers = #tpu.dot_dimension_numbers<[1], [0], [0], [1], [0, 0, 1, 1], [], []>} : vector<64x128xf32>, vector<128x128xf32>, vector<64x128xf32> -> vector<64x128xf32>
    %c0_4 = arith.constant 0 : index
    %c0_5 = arith.constant 0 : index
    %c0_6 = arith.constant 0 : index
    %4 = vector.load %arg5[%c0_4, %c0_5, %c0_6] : memref<2x1x128xf32, #tpu.memory_space<vmem>>, vector<1x1x128xf32>
    %5 = vector.shape_cast %4 : vector<1x1x128xf32> to vector<1x128xf32>
    %6 = vector.broadcast %5 : vector<1x128xf32> to vector<64x128xf32>
    %7 = arith.addf %3, %6 : vector<64x128xf32>
    %8 = vector.shape_cast %7 : vector<64x128xf32> to vector<8x8x128xf32>
    %c0_7 = arith.constant 0 : index
    %c0_8 = arith.constant 0 : index
    %c0_9 = arith.constant 0 : index
    %9 = vector.load %arg4[%c0_7, %c0_8, %c0_9] : memref<2x128x128xf32, #tpu.memory_space<vmem>>, vector<1x128x128xf32>
    %10 = vector.shape_cast %9 : vector<1x128x128xf32> to vector<128x128xf32>
    %11 = vector.extract_strided_slice %8 {offsets = [0, 0, 0], sizes = [1, 8, 128], strides = [1, 1, 1]} : vector<8x8x128xf32> to vector<1x8x128xf32>
    %12 = vector.shape_cast %11 : vector<1x8x128xf32> to vector<8x128xf32>
    %cst_10 = arith.constant 0.000000e+00 : f32
    %13 = vector.broadcast %cst_10 : f32 to vector<8x128xf32>
    %14 = arith.maximumf %12, %13 : vector<8x128xf32>
    %cst_11 = arith.constant dense<0.000000e+00> : vector<8x128xf32>
    %15 = tpu.matmul %14, %10, %cst_11 {dimension_numbers = #tpu.dot_dimension_numbers<[1], [0], [0], [1], [0, 0, 1, 1], [], []>} : vector<8x128xf32>, vector<128x128xf32>, vector<8x128xf32> -> vector<8x128xf32>
    %16 = vector.extract_strided_slice %8 {offsets = [1, 0, 0], sizes = [1, 8, 128], strides = [1, 1, 1]} : vector<8x8x128xf32> to vector<1x8x128xf32>
    %17 = vector.shape_cast %16 : vector<1x8x128xf32> to vector<8x128xf32>
    %18 = arith.addf %15, %17 : vector<8x128xf32>
    %cst_12 = arith.constant 0.000000e+00 : f32
    %19 = vector.broadcast %cst_12 : f32 to vector<8x128xf32>
    %20 = arith.maximumf %18, %19 : vector<8x128xf32>
    %cst_13 = arith.constant dense<0.000000e+00> : vector<8x128xf32>
    %21 = tpu.matmul %20, %10, %cst_13 {dimension_numbers = #tpu.dot_dimension_numbers<[1], [0], [0], [1], [0, 0, 1, 1], [], []>} : vector<8x128xf32>, vector<128x128xf32>, vector<8x128xf32> -> vector<8x128xf32>
    %22 = vector.extract_strided_slice %8 {offsets = [2, 0, 0], sizes = [1, 8, 128], strides = [1, 1, 1]} : vector<8x8x128xf32> to vector<1x8x128xf32>
    %23 = vector.shape_cast %22 : vector<1x8x128xf32> to vector<8x128xf32>
    %24 = arith.addf %21, %23 : vector<8x128xf32>
    %cst_14 = arith.constant 0.000000e+00 : f32
    %25 = vector.broadcast %cst_14 : f32 to vector<8x128xf32>
    %26 = arith.maximumf %24, %25 : vector<8x128xf32>
    %cst_15 = arith.constant dense<0.000000e+00> : vector<8x128xf32>
    %27 = tpu.matmul %26, %10, %cst_15 {dimension_numbers = #tpu.dot_dimension_numbers<[1], [0], [0], [1], [0, 0, 1, 1], [], []>} : vector<8x128xf32>, vector<128x128xf32>, vector<8x128xf32> -> vector<8x128xf32>
    %28 = vector.extract_strided_slice %8 {offsets = [3, 0, 0], sizes = [1, 8, 128], strides = [1, 1, 1]} : vector<8x8x128xf32> to vector<1x8x128xf32>
    %29 = vector.shape_cast %28 : vector<1x8x128xf32> to vector<8x128xf32>
    %30 = arith.addf %27, %29 : vector<8x128xf32>
    %cst_16 = arith.constant 0.000000e+00 : f32
    %31 = vector.broadcast %cst_16 : f32 to vector<8x128xf32>
    %32 = arith.maximumf %30, %31 : vector<8x128xf32>
    %cst_17 = arith.constant dense<0.000000e+00> : vector<8x128xf32>
    %33 = tpu.matmul %32, %10, %cst_17 {dimension_numbers = #tpu.dot_dimension_numbers<[1], [0], [0], [1], [0, 0, 1, 1], [], []>} : vector<8x128xf32>, vector<128x128xf32>, vector<8x128xf32> -> vector<8x128xf32>
    %34 = vector.extract_strided_slice %8 {offsets = [4, 0, 0], sizes = [1, 8, 128], strides = [1, 1, 1]} : vector<8x8x128xf32> to vector<1x8x128xf32>
    %35 = vector.shape_cast %34 : vector<1x8x128xf32> to vector<8x128xf32>
    %36 = arith.addf %33, %35 : vector<8x128xf32>
    %cst_18 = arith.constant 0.000000e+00 : f32
    %37 = vector.broadcast %cst_18 : f32 to vector<8x128xf32>
    %38 = arith.maximumf %36, %37 : vector<8x128xf32>
    %cst_19 = arith.constant dense<0.000000e+00> : vector<8x128xf32>
    %39 = tpu.matmul %38, %10, %cst_19 {dimension_numbers = #tpu.dot_dimension_numbers<[1], [0], [0], [1], [0, 0, 1, 1], [], []>} : vector<8x128xf32>, vector<128x128xf32>, vector<8x128xf32> -> vector<8x128xf32>
    %40 = vector.extract_strided_slice %8 {offsets = [5, 0, 0], sizes = [1, 8, 128], strides = [1, 1, 1]} : vector<8x8x128xf32> to vector<1x8x128xf32>
    %41 = vector.shape_cast %40 : vector<1x8x128xf32> to vector<8x128xf32>
    %42 = arith.addf %39, %41 : vector<8x128xf32>
    %cst_20 = arith.constant 0.000000e+00 : f32
    %43 = vector.broadcast %cst_20 : f32 to vector<8x128xf32>
    %44 = arith.maximumf %42, %43 : vector<8x128xf32>
    %cst_21 = arith.constant dense<0.000000e+00> : vector<8x128xf32>
    %45 = tpu.matmul %44, %10, %cst_21 {dimension_numbers = #tpu.dot_dimension_numbers<[1], [0], [0], [1], [0, 0, 1, 1], [], []>} : vector<8x128xf32>, vector<128x128xf32>, vector<8x128xf32> -> vector<8x128xf32>
    %46 = vector.extract_strided_slice %8 {offsets = [6, 0, 0], sizes = [1, 8, 128], strides = [1, 1, 1]} : vector<8x8x128xf32> to vector<1x8x128xf32>
    %47 = vector.shape_cast %46 : vector<1x8x128xf32> to vector<8x128xf32>
    %48 = arith.addf %45, %47 : vector<8x128xf32>
    %cst_22 = arith.constant 0.000000e+00 : f32
    %49 = vector.broadcast %cst_22 : f32 to vector<8x128xf32>
    %50 = arith.maximumf %48, %49 : vector<8x128xf32>
    %cst_23 = arith.constant dense<0.000000e+00> : vector<8x128xf32>
    %51 = tpu.matmul %50, %10, %cst_23 {dimension_numbers = #tpu.dot_dimension_numbers<[1], [0], [0], [1], [0, 0, 1, 1], [], []>} : vector<8x128xf32>, vector<128x128xf32>, vector<8x128xf32> -> vector<8x128xf32>
    %52 = vector.extract_strided_slice %8 {offsets = [7, 0, 0], sizes = [1, 8, 128], strides = [1, 1, 1]} : vector<8x8x128xf32> to vector<1x8x128xf32>
    %53 = vector.shape_cast %52 : vector<1x8x128xf32> to vector<8x128xf32>
    %54 = arith.addf %51, %53 : vector<8x128xf32>
    %cst_24 = arith.constant 0.000000e+00 : f32
    %55 = vector.broadcast %cst_24 : f32 to vector<8x128xf32>
    %56 = arith.maximumf %54, %55 : vector<8x128xf32>
    %57 = tpu.concatenate %14, %20, %26, %32, %38, %44, %50, %56 in 0 : vector<8x128xf32>, vector<8x128xf32>, vector<8x128xf32>, vector<8x128xf32>, vector<8x128xf32>, vector<8x128xf32>, vector<8x128xf32>, vector<8x128xf32> -> vector<64x128xf32>
    %c0_25 = arith.constant 0 : index
    %c0_26 = arith.constant 0 : index
    %c0_27 = arith.constant 0 : index
    %58 = vector.load %arg3[%c0_25, %c0_26, %c0_27] : memref<1x128x128xf32, #tpu.memory_space<vmem>>, vector<1x128x128xf32>
    %59 = vector.shape_cast %58 : vector<1x128x128xf32> to vector<128x128xf32>
    %cst_28 = arith.constant dense<0.000000e+00> : vector<64x128xf32>
    %60 = tpu.matmul %57, %59, %cst_28 {dimension_numbers = #tpu.dot_dimension_numbers<[1], [0], [0], [1], [0, 0, 1, 1], [], []>} : vector<64x128xf32>, vector<128x128xf32>, vector<64x128xf32> -> vector<64x128xf32>
    %c1 = arith.constant 1 : index
    %c0_29 = arith.constant 0 : index
    %c0_30 = arith.constant 0 : index
    %61 = vector.load %arg5[%c1, %c0_29, %c0_30] : memref<2x1x128xf32, #tpu.memory_space<vmem>>, vector<1x1x128xf32>
    %62 = vector.shape_cast %61 : vector<1x1x128xf32> to vector<1x128xf32>
    %63 = vector.broadcast %62 : vector<1x128xf32> to vector<64x128xf32>
    %64 = arith.addf %60, %63 : vector<64x128xf32>
    %65 = vector.shape_cast %64 : vector<64x128xf32> to vector<8x8x128xf32>
    %c1_31 = arith.constant 1 : index
    %c0_32 = arith.constant 0 : index
    %c0_33 = arith.constant 0 : index
    %66 = vector.load %arg4[%c1_31, %c0_32, %c0_33] : memref<2x128x128xf32, #tpu.memory_space<vmem>>, vector<1x128x128xf32>
    %67 = vector.shape_cast %66 : vector<1x128x128xf32> to vector<128x128xf32>
    %68 = vector.extract_strided_slice %65 {offsets = [0, 0, 0], sizes = [1, 8, 128], strides = [1, 1, 1]} : vector<8x8x128xf32> to vector<1x8x128xf32>
    %69 = vector.shape_cast %68 : vector<1x8x128xf32> to vector<8x128xf32>
    %cst_34 = arith.constant 0.000000e+00 : f32
    %70 = vector.broadcast %cst_34 : f32 to vector<8x128xf32>
    %71 = arith.maximumf %69, %70 : vector<8x128xf32>
    %cst_35 = arith.constant dense<0.000000e+00> : vector<8x128xf32>
    %72 = tpu.matmul %71, %67, %cst_35 {dimension_numbers = #tpu.dot_dimension_numbers<[1], [0], [0], [1], [0, 0, 1, 1], [], []>} : vector<8x128xf32>, vector<128x128xf32>, vector<8x128xf32> -> vector<8x128xf32>
    %73 = vector.extract_strided_slice %65 {offsets = [1, 0, 0], sizes = [1, 8, 128], strides = [1, 1, 1]} : vector<8x8x128xf32> to vector<1x8x128xf32>
    %74 = vector.shape_cast %73 : vector<1x8x128xf32> to vector<8x128xf32>
    %75 = arith.addf %72, %74 : vector<8x128xf32>
    %cst_36 = arith.constant 0.000000e+00 : f32
    %76 = vector.broadcast %cst_36 : f32 to vector<8x128xf32>
    %77 = arith.maximumf %75, %76 : vector<8x128xf32>
    %cst_37 = arith.constant dense<0.000000e+00> : vector<8x128xf32>
    %78 = tpu.matmul %77, %67, %cst_37 {dimension_numbers = #tpu.dot_dimension_numbers<[1], [0], [0], [1], [0, 0, 1, 1], [], []>} : vector<8x128xf32>, vector<128x128xf32>, vector<8x128xf32> -> vector<8x128xf32>
    %79 = vector.extract_strided_slice %65 {offsets = [2, 0, 0], sizes = [1, 8, 128], strides = [1, 1, 1]} : vector<8x8x128xf32> to vector<1x8x128xf32>
    %80 = vector.shape_cast %79 : vector<1x8x128xf32> to vector<8x128xf32>
    %81 = arith.addf %78, %80 : vector<8x128xf32>
    %cst_38 = arith.constant 0.000000e+00 : f32
    %82 = vector.broadcast %cst_38 : f32 to vector<8x128xf32>
    %83 = arith.maximumf %81, %82 : vector<8x128xf32>
    %cst_39 = arith.constant dense<0.000000e+00> : vector<8x128xf32>
    %84 = tpu.matmul %83, %67, %cst_39 {dimension_numbers = #tpu.dot_dimension_numbers<[1], [0], [0], [1], [0, 0, 1, 1], [], []>} : vector<8x128xf32>, vector<128x128xf32>, vector<8x128xf32> -> vector<8x128xf32>
    %85 = vector.extract_strided_slice %65 {offsets = [3, 0, 0], sizes = [1, 8, 128], strides = [1, 1, 1]} : vector<8x8x128xf32> to vector<1x8x128xf32>
    %86 = vector.shape_cast %85 : vector<1x8x128xf32> to vector<8x128xf32>
    %87 = arith.addf %84, %86 : vector<8x128xf32>
    %cst_40 = arith.constant 0.000000e+00 : f32
    %88 = vector.broadcast %cst_40 : f32 to vector<8x128xf32>
    %89 = arith.maximumf %87, %88 : vector<8x128xf32>
    %cst_41 = arith.constant dense<0.000000e+00> : vector<8x128xf32>
    %90 = tpu.matmul %89, %67, %cst_41 {dimension_numbers = #tpu.dot_dimension_numbers<[1], [0], [0], [1], [0, 0, 1, 1], [], []>} : vector<8x128xf32>, vector<128x128xf32>, vector<8x128xf32> -> vector<8x128xf32>
    %91 = vector.extract_strided_slice %65 {offsets = [4, 0, 0], sizes = [1, 8, 128], strides = [1, 1, 1]} : vector<8x8x128xf32> to vector<1x8x128xf32>
    %92 = vector.shape_cast %91 : vector<1x8x128xf32> to vector<8x128xf32>
    %93 = arith.addf %90, %92 : vector<8x128xf32>
    %cst_42 = arith.constant 0.000000e+00 : f32
    %94 = vector.broadcast %cst_42 : f32 to vector<8x128xf32>
    %95 = arith.maximumf %93, %94 : vector<8x128xf32>
    %cst_43 = arith.constant dense<0.000000e+00> : vector<8x128xf32>
    %96 = tpu.matmul %95, %67, %cst_43 {dimension_numbers = #tpu.dot_dimension_numbers<[1], [0], [0], [1], [0, 0, 1, 1], [], []>} : vector<8x128xf32>, vector<128x128xf32>, vector<8x128xf32> -> vector<8x128xf32>
    %97 = vector.extract_strided_slice %65 {offsets = [5, 0, 0], sizes = [1, 8, 128], strides = [1, 1, 1]} : vector<8x8x128xf32> to vector<1x8x128xf32>
    %98 = vector.shape_cast %97 : vector<1x8x128xf32> to vector<8x128xf32>
    %99 = arith.addf %96, %98 : vector<8x128xf32>
    %cst_44 = arith.constant 0.000000e+00 : f32
    %100 = vector.broadcast %cst_44 : f32 to vector<8x128xf32>
    %101 = arith.maximumf %99, %100 : vector<8x128xf32>
    %cst_45 = arith.constant dense<0.000000e+00> : vector<8x128xf32>
    %102 = tpu.matmul %101, %67, %cst_45 {dimension_numbers = #tpu.dot_dimension_numbers<[1], [0], [0], [1], [0, 0, 1, 1], [], []>} : vector<8x128xf32>, vector<128x128xf32>, vector<8x128xf32> -> vector<8x128xf32>
    %103 = vector.extract_strided_slice %65 {offsets = [6, 0, 0], sizes = [1, 8, 128], strides = [1, 1, 1]} : vector<8x8x128xf32> to vector<1x8x128xf32>
    %104 = vector.shape_cast %103 : vector<1x8x128xf32> to vector<8x128xf32>
    %105 = arith.addf %102, %104 : vector<8x128xf32>
    %cst_46 = arith.constant 0.000000e+00 : f32
    %106 = vector.broadcast %cst_46 : f32 to vector<8x128xf32>
    %107 = arith.maximumf %105, %106 : vector<8x128xf32>
    %cst_47 = arith.constant dense<0.000000e+00> : vector<8x128xf32>
    %108 = tpu.matmul %107, %67, %cst_47 {dimension_numbers = #tpu.dot_dimension_numbers<[1], [0], [0], [1], [0, 0, 1, 1], [], []>} : vector<8x128xf32>, vector<128x128xf32>, vector<8x128xf32> -> vector<8x128xf32>
    %109 = vector.extract_strided_slice %65 {offsets = [7, 0, 0], sizes = [1, 8, 128], strides = [1, 1, 1]} : vector<8x8x128xf32> to vector<1x8x128xf32>
    %110 = vector.shape_cast %109 : vector<1x8x128xf32> to vector<8x128xf32>
    %111 = arith.addf %108, %110 : vector<8x128xf32>
    %cst_48 = arith.constant 0.000000e+00 : f32
    %112 = vector.broadcast %cst_48 : f32 to vector<8x128xf32>
    %113 = arith.maximumf %111, %112 : vector<8x128xf32>
    %c0_49 = arith.constant 0 : index
    %c0_50 = arith.constant 0 : index
    %114 = vector.load %arg6[%c0_49, %c0_50] : memref<128x128xf32, #tpu.memory_space<vmem>>, vector<128x128xf32>
    %cst_51 = arith.constant dense<0.000000e+00> : vector<8x128xf32>
    %115 = tpu.matmul %113, %114, %cst_51 {dimension_numbers = #tpu.dot_dimension_numbers<[1], [0], [0], [1], [0, 0, 1, 1], [], []>} : vector<8x128xf32>, vector<128x128xf32>, vector<8x128xf32> -> vector<8x128xf32>
    %c0_52 = arith.constant 0 : index
    %c0_53 = arith.constant 0 : index
    %116 = vector.load %arg7[%c0_52, %c0_53] : memref<1x128xf32, #tpu.memory_space<vmem>>, vector<1x128xf32>
    %117 = vector.broadcast %116 : vector<1x128xf32> to vector<8x128xf32>
    %118 = arith.addf %115, %117 : vector<8x128xf32>
    %c0_54 = arith.constant 0 : index
    %c0_55 = arith.constant 0 : index
    %119 = vector.load %arg8[%c0_54, %c0_55] : memref<8x128xf32, #tpu.memory_space<vmem>>, vector<8x128xf32>
    tpu.vector_store %arg8[%c0_54, %c0_55], %118 {strides = array<i32>} : memref<8x128xf32, #tpu.memory_space<vmem>>, vector<8x128xf32>,
    return
  }
  func.func @transform_0(%arg0: i32) -> (i32, i32, i32) {
    %c0_i32 = arith.constant 0 : i32
    %c0_i32_0 = arith.constant 0 : i32
    %c0_i32_1 = arith.constant 0 : i32
    return %c0_i32, %arg0, %c0_i32_0 : i32, i32, i32
  }
  func.func @transform_1(%arg0: i32) -> (i32, i32) {
    %c0_i32 = arith.constant 0 : i32
    %c0_i32_0 = arith.constant 0 : i32
    %c0_i32_1 = arith.constant 0 : i32
    return %c0_i32, %c0_i32_0 : i32, i32
  }
  func.func @transform_2(%arg0: i32) -> (i32, i32, i32) {
    %c0_i32 = arith.constant 0 : i32
    %c0_i32_0 = arith.constant 0 : i32
    %c0_i32_1 = arith.constant 0 : i32
    %c0_i32_2 = arith.constant 0 : i32
    return %c0_i32, %c0_i32_0, %c0_i32_1 : i32, i32, i32
  }
  func.func @transform_3(%arg0: i32) -> (i32, i32, i32) {
    %c0_i32 = arith.constant 0 : i32
    %c0_i32_0 = arith.constant 0 : i32
    %c0_i32_1 = arith.constant 0 : i32
    %c0_i32_2 = arith.constant 0 : i32
    return %c0_i32, %c0_i32_0, %c0_i32_1 : i32, i32, i32
  }
  func.func @transform_4(%arg0: i32) -> (i32, i32, i32) {
    %c0_i32 = arith.constant 0 : i32
    %c0_i32_0 = arith.constant 0 : i32
    %c0_i32_1 = arith.constant 0 : i32
    %c0_i32_2 = arith.constant 0 : i32
    return %c0_i32, %c0_i32_0, %c0_i32_1 : i32, i32, i32
  }
  func.func @transform_5(%arg0: i32) -> (i32, i32) {
    %c0_i32 = arith.constant 0 : i32
    %c0_i32_0 = arith.constant 0 : i32
    %c0_i32_1 = arith.constant 0 : i32
    return %c0_i32, %c0_i32_0 : i32, i32
  }
  func.func @transform_6(%arg0: i32) -> (i32, i32) {
    %c0_i32 = arith.constant 0 : i32
    %c0_i32_0 = arith.constant 0 : i32
    %c0_i32_1 = arith.constant 0 : i32
    return %c0_i32, %c0_i32_0 : i32, i32
  }
  func.func @transform_7(%arg0: i32) -> (i32, i32) {
    %c0_i32 = arith.constant 0 : i32
    %c0_i32_0 = arith.constant 0 : i32
    return %arg0, %c0_i32 : i32, i32
  }
}

</mosaic_0001>

<bundles_post_ra>
// kernel: recurrent_forward.1
= control target key start
LH: loop header
LB: loop body
LE: loop exit
PB: predicated region body
PF: predicated region fallthrough
CT: control target
= control target key end

     0   :  { %12 = vsyncpa [#allocation3], 0  ;;  %s3633_s0 = inlined_call_operand.hbm [shape: f32[8,8,128], index: 0, kind: input, shape index: {}]   ;;  %s3634_s1 = inlined_call_operand.hbm [shape: f32[128,128], index: 1, kind: input, shape index: {}]   ;;  %s3635_s2 = inlined_call_operand.hbm [shape: f32[1,128,128], index: 2, kind: input, shape index: {}]   ;;  %s3636_s3 = inlined_call_operand.hbm [shape: f32[2,128,128], index: 3, kind: input, shape index: {}]   ;;  %s3637_s4 = inlined_call_operand.hbm [shape: f32[2,1,128], index: 4, kind: input, shape index: {}]   ;;  %s3638_s5 = inlined_call_operand.hbm [shape: f32[128,128], index: 5, kind: input, shape index: {}]   ;;  %s3639_s6 = inlined_call_operand.hbm [shape: f32[1,128], index: 6, kind: input, shape index: {}]   ;;  %s3640_s7 = inlined_call_operand.hbm [shape: f32[8,128], index: 7, kind: output, shape index: {}]  }
   0x1   :  { %13 = vsyncpa [#allocation6], 0 }
   0x2   :  { %14 = vsyncpa [#allocation9], 0 }
   0x3   :  { %15 = vsyncpa [#allocation12], 0 }
   0x4   :  { %16 = vsyncpa [#allocation4], 0  ;;  %s3070_s24 = smov [#allocation5]   ;;  %s3071_s26 = smov [#allocation8]  }
   0x5   :  { %s34_s25 = sshll.u32 %s3070_s24, 4  ;;  %s58_s27 = sshll.u32 %s3071_s26, 4  ;;  %s35_s25 = int_to_ptr.vmem [resolvable:$true] %s34_s25  ;;  %s3125_s27 = int_to_ptr.vmem [resolvable:$true] %s58_s27 }
   0x6   :  { %s2884_s30 = scalar_lea.hbm %s3634_s1, 2048 }
   0x7   :  { %p2885_p0 = scmp.ne.s32.totalorder %s3634_s1, %s2884_s30  ;;  %p2888_p1 = scmp.lt.u32.totalorder %s2884_s30, %s3634_s1 }
   0x9   :  { %p2890_p2 = pnand %p2888_p1, %p2885_p0 }
   0xb   :  { %2893 = shalt.err (!%p2890_p2)
}
   0xc   :  { %s2894_s12 = scalar_lea.vmem %s35_s25, 2048  ;;  %p2899_p4 = scmp.lt.s32.totalorder %s35_s25, %s35_s25 }
   0xd   :  { %p2895_p3 = scmp.ne.s32.totalorder %s35_s25, %s2894_s12  ;;  %p2900_p5 = scmp.lt.s32.totalorder %s2894_s12, %s2894_s12 }
   0xf   :  { %p2901_p6 = por %p2900_p5, %p2899_p4 }
  0x11   :  { %p2902_p7 = pnand %p2901_p6, %p2895_p3 }
  0x13   :  { %2905 = shalt.err (!%p2902_p7)
}
  0x14   :  { %s3072_s13 = smov 128   ;;  %s3073_s14 = smov 8  }
  0x15   :  { %40 = dma.hbm_to_vmem [thread:$0]  %s3634_s1, 2048, %s35_s25, [#allocation6], %s3072_s13, %s3072_s13, %s3073_s14  }
  0x16   :  { %s2906_s19 = scalar_lea.hbm %s3636_s3, 4096 }
  0x17   :  { %p2907_p8 = scmp.ne.s32.totalorder %s3636_s3, %s2906_s19  ;;  %p2910_p9 = scmp.lt.u32.totalorder %s2906_s19, %s3636_s3 }
  0x19   :  { %p2912_p10 = pnand %p2910_p9, %p2907_p8 }
  0x1b   :  { %2915 = shalt.err (!%p2912_p10)
}
  0x1c   :  { %s2916_s24 = scalar_lea.vmem %s3125_s27, 4096  ;;  %p2921_p12 = scmp.lt.s32.totalorder %s3125_s27, %s3125_s27 }
  0x1d   :  { %p2917_p11 = scmp.ne.s32.totalorder %s3125_s27, %s2916_s24  ;;  %p2922_p13 = scmp.lt.s32.totalorder %s2916_s24, %s2916_s24 }
  0x1f   :  { %p2923_p0 = por %p2922_p13, %p2921_p12 }
  0x21   :  { %p2924_p1 = pnand %p2923_p0, %p2917_p11 }
  0x23   :  { %2927 = shalt.err (!%p2924_p1)
}
  0x24   :  { %64 = dma.hbm_to_vmem [thread:$0]  %s3636_s3, 4096, %s3125_s27, [#allocation9], %s3072_s13, %s3072_s13, %s3073_s14  }
  0x25   :  { %s3074_s26 = smov [#allocation11]   ;;  %s3075_s29 = smov [#allocation2]  }
  0x26   :  { %s82_s28 = sshll.u32 %s3074_s26, 4  ;;  %s22_s30 = sshll.u32 %s3075_s29, 4  ;;  %s83_s28 = int_to_ptr.vmem [resolvable:$true] %s82_s28  ;;  %s3162_s30 = int_to_ptr.vmem [resolvable:$true] %s22_s30 }
  0x27   :  { %s2928_s10 = scalar_lea.hbm %s3638_s5, 2048 }
  0x28   :  { %p2929_p2 = scmp.ne.s32.totalorder %s3638_s5, %s2928_s10  ;;  %p2932_p3 = scmp.lt.u32.totalorder %s2928_s10, %s3638_s5 }
  0x2a   :  { %p2934_p4 = pnand %p2932_p3, %p2929_p2 }
  0x2c   :  { %2937 = shalt.err (!%p2934_p4)
}
  0x2d   :  { %s2938_s3 = scalar_lea.vmem %s83_s28, 2048  ;;  %p2943_p6 = scmp.lt.s32.totalorder %s83_s28, %s83_s28 }
  0x2e   :  { %p2939_p5 = scmp.ne.s32.totalorder %s83_s28, %s2938_s3  ;;  %p2944_p7 = scmp.lt.s32.totalorder %s2938_s3, %s2938_s3 }
  0x30   :  { %p2945_p8 = por %p2944_p7, %p2943_p6 }
  0x32   :  { %p2946_p9 = pnand %p2945_p8, %p2939_p5 }
  0x34   :  { %2949 = shalt.err (!%p2946_p9)
}
  0x35   :  { %88 = dma.hbm_to_vmem [thread:$0]  %s3638_s5, 2048, %s83_s28, [#allocation12], %s3072_s13, %s3072_s13, %s3073_s14  }
  0x36   :  { %s2950_s20 = scalar_lea.hbm %s3633_s0, 1024 }
  0x37   :  { %p2951_p10 = scmp.ne.s32.totalorder %s3633_s0, %s2950_s20  ;;  %p2954_p11 = scmp.lt.u32.totalorder %s2950_s20, %s3633_s0 }
  0x39   :  { %p2956_p12 = pnand %p2954_p11, %p2951_p10 }
  0x3b   :  { %2959 = shalt.err (!%p2956_p12)
}
  0x3c   :  { %s2960_s1 = scalar_lea.vmem %s3162_s30, 1024  ;;  %p2965_p0 = scmp.lt.s32.totalorder %s3162_s30, %s3162_s30 }
  0x3d   :  { %p2961_p13 = scmp.ne.s32.totalorder %s3162_s30, %s2960_s1  ;;  %p2966_p1 = scmp.lt.s32.totalorder %s2960_s1, %s2960_s1 }
  0x3f   :  { %p2967_p2 = por %p2966_p1, %p2965_p0 }
  0x41   :  { %p2968_p3 = pnand %p2967_p2, %p2961_p13 }
  0x43   :  { %2971 = shalt.err (!%p2968_p3)
}
  0x44   :  { %28 = dma.hbm_to_vmem [thread:$0]  %s3633_s0, 1024, %s3162_s30, [#allocation3], %s3072_s13, %s3072_s13, %s3073_s14  }
  0x45   :  { %s3076_s26 = smov [#allocation7]   ;;  %s3077_s29 = smov [#allocation10]  }
  0x46   :  { %s46_s28 = sshll.u32 %s3076_s26, 4  ;;  %s70_s8 = sshll.u32 %s3077_s29, 4  ;;  %s47_s28 = int_to_ptr.vmem [resolvable:$true] %s46_s28  ;;  %s3199_s8 = int_to_ptr.vmem [resolvable:$true] %s70_s8 }
  0x47   :  { %s2972_s11 = scalar_lea.hbm %s3635_s2, 2048 }
  0x48   :  { %p2973_p4 = scmp.ne.s32.totalorder %s3635_s2, %s2972_s11  ;;  %p2976_p5 = scmp.lt.u32.totalorder %s2972_s11, %s3635_s2 }
  0x4a   :  { %p2978_p6 = pnand %p2976_p5, %p2973_p4 }
  0x4c   :  { %2981 = shalt.err (!%p2978_p6)
}
  0x4d   :  { %s2982_s0 = scalar_lea.vmem %s47_s28, 2048  ;;  %p2987_p8 = scmp.lt.s32.totalorder %s47_s28, %s47_s28 }
  0x4e   :  { %p2983_p7 = scmp.ne.s32.totalorder %s47_s28, %s2982_s0  ;;  %p2988_p9 = scmp.lt.s32.totalorder %s2982_s0, %s2982_s0 }
  0x50   :  { %p2989_p10 = por %p2988_p9, %p2987_p8 }
  0x52   :  { %p2990_p11 = pnand %p2989_p10, %p2983_p7 }
  0x54   :  { %2993 = shalt.err (!%p2990_p11)
}
  0x55   :  { %52 = dma.hbm_to_vmem [thread:$0]  %s3635_s2, 2048, %s47_s28, [#allocation6], %s3072_s13, %s3072_s13, %s3073_s14  }
  0x56   :  { %s2994_s19 = scalar_lea.hbm %s3637_s4, 32 }
  0x57   :  { %p2995_p12 = scmp.ne.s32.totalorder %s3637_s4, %s2994_s19  ;;  %p2998_p13 = scmp.lt.u32.totalorder %s2994_s19, %s3637_s4 }
  0x59   :  { %p3000_p0 = pnand %p2998_p13, %p2995_p12 }
  0x5b   :  { %3003 = shalt.err (!%p3000_p0)
}
  0x5c   :  { %s3004_s24 = scalar_lea.vmem %s3199_s8, 32  ;;  %p3009_p2 = scmp.lt.s32.totalorder %s3199_s8, %s3199_s8 }
  0x5d   :  { %p3005_p1 = scmp.ne.s32.totalorder %s3199_s8, %s3004_s24  ;;  %p3010_p3 = scmp.lt.s32.totalorder %s3004_s24, %s3004_s24 }
  0x5f   :  { %p3011_p4 = por %p3010_p3, %p3009_p2 }
  0x61   :  { %p3012_p5 = pnand %p3011_p4, %p3005_p1 }
  0x63   :  { %3015 = shalt.err (!%p3012_p5)
}
  0x64   :  { %s3078_s2 = smov 16   ;;  %s3079_s13 = smov 1  }
  0x65   :  { %76 = dma.hbm_to_vmem [thread:$0]  %s3637_s4, 32, %s3199_s8, [#allocation9], %s3078_s2, %s3078_s2, %s3079_s13  }
  0x66   :  { %s3080_s5 = smov [#allocation13]   ;;  %s3016_s29 = scalar_lea.hbm %s3639_s6, 16 }
  0x67   :  { %s95_s25 = sshll.u32 %s3080_s5, 4  ;;  %p3017_p6 = scmp.ne.s32.totalorder %s3639_s6, %s3016_s29  ;;  %s96_s25 = int_to_ptr.vmem [resolvable:$true] %s95_s25 }
  0x68   :  { %p3020_p7 = scmp.lt.u32.totalorder %s3016_s29, %s3639_s6 }
  0x6a   :  { %p3022_p8 = pnand %p3020_p7, %p3017_p6 }
  0x6c   :  { %3025 = shalt.err (!%p3022_p8)
}
  0x6d   :  { %s3026_s15 = scalar_lea.vmem %s96_s25, 16  ;;  %s3030_s4 = scalar_lea.vmem %s96_s25, 32 }
  0x6e   :  { %p3027_p9 = scmp.ne.s32.totalorder %s96_s25, %s3026_s15  ;;  %p3031_p10 = scmp.lt.s32.totalorder %s96_s25, %s96_s25 }
  0x6f   :  { %p3032_p11 = scmp.lt.s32.totalorder %s3030_s4, %s3026_s15 }
  0x71   :  { %p3033_p12 = por %p3032_p11, %p3031_p10 }
  0x73   :  { %p3034_p13 = pnand %p3033_p12, %p3027_p9 }
  0x75   :  { %3037 = shalt.err (!%p3034_p13)
}
  0x76   :  { %98 = dma.hbm_to_vmem [thread:$0]  %s3639_s6, 16, %s96_s25, [#allocation12]  }
  0x77   :  { %3060 = dma.done.wait [#allocation3], 1024  }
  0x78   :  { %3061 = vsyncadd [#allocation3], 4294966272 }
  0x79   :  { %3062 = dma.done.wait [#allocation6], 4096  }
  0x7a   :  { %3063 = vsyncadd [#allocation6], 4294963200 }
  0x7b   :  { %3064 = dma.done.wait [#allocation9], 4128  }
  0x7c   :  { %3065 = vsyncadd [#allocation9], 4294963168 }
  0x7d   :  { %3066 = dma.done.wait [#allocation12], 2064  }
  0x7e   :  { %3067 = vsyncadd [#allocation12], 4294965232  ;;  %v3081_v0 = vmov 0.0|0.0   ;;  %v128_v1 = vld [vmem:[#allocation5] sm:$0xff]  ;;  %v129_v2 = vld [vmem:[#allocation5 + $0x8] sm:$0xff]  ;;  %vm3082_vm0 = vmmov 0  }
  0x7f   :  { %2477 = vmatprep.subr.bf16.mxu1 %v3081_v0  ;;  %v130_v3 = vld [vmem:[#allocation5 + $0x10] sm:$0xff]  ;;  %v2445_v4 = vpack.c.bf16 %v129_v2, %v128_v1  ;;  %v131_v5 = vld [vmem:[#allocation5 + $0x18] sm:$0xff]  ;;  %v132_v7 = vld [vmem:[#allocation5 + $0x20] sm:$0xff]  ;;  %v3083_v51 = vmov 0.0   ;;  %s3084_s6 = smov [#allocation14]  }
  0x80   :  { %v2449_v6 = vpack.c.bf16 %v131_v5, %v130_v3  ;;  %v133_v8 = vld [vmem:[#allocation5 + $0x28] sm:$0xff]  ;;  %v134_v10 = vld [vmem:[#allocation5 + $0x30] sm:$0xff]  ;;  %v135_v11 = vld [vmem:[#allocation5 + $0x38] sm:$0xff]  ;;  %1908 = vmatprep.mubr.msk.f32.mxu1 %vm3082_vm0, %v3083_v51  ;;  %s1514_s3 = sshll.u32 %s3084_s6, 4  ;;  %s1515_s3 = int_to_ptr.vmem [resolvable:$true] %s1514_s3 }
  0x81   :  { %2446 = vmatprep.subr.bf16.mxu0 %v2445_v4  ;;  %v2453_v9 = vpack.c.bf16 %v133_v8, %v132_v7  ;;  %v120_v12 = vld [vmem:[#allocation2] sm:$0xff]  ;;  %v257_v14 = vld [vmem:[#allocation8 + $0x8] sm:$0xff]  ;;  %v258_v15 = vld [vmem:[#allocation8 + $0x10] sm:$0xff]  ;;  %v2457_v18 = vpack.c.bf16 %v135_v11, %v134_v10  ;;  %s3038_s0 = scalar_lea.vmem %s1515_s3, 128  ;;  %p3043_p1 = scmp.lt.s32.totalorder %s1515_s3, %s1515_s3 }
  0x82   :  { %2448 = vmatpush3.bf16.msra.mxu0 %v2445_v4  ;;  %1864 = vmatprep.mubr.f32.mxu0 %v120_v12  ;;  %v256_v13 = vld [vmem:[#allocation8] sm:$0xff]  ;;  %v259_v17 = vld [vmem:[#allocation8 + $0x18] sm:$0xff]  ;;  %v137_v21 = vld [vmem:[#allocation5 + $0x48] sm:$0xff]  ;;  %p3039_p0 = scmp.ne.s32.totalorder %s1515_s3, %s3038_s0  ;;  %p3044_p2 = scmp.lt.s32.totalorder %s3038_s0, %s3038_s0 }
  0x83   :  { %2450 = vmatprep.subr.bf16.mxu0 %v2449_v6  ;;  %v3246_v16 = vpack.c.bf16 %v257_v14, %v256_v13  ;;  %v136_v19 = vld [vmem:[#allocation5 + $0x40] sm:$0xff]  ;;  %v3249_v20 = vpack.c.bf16 %v259_v17, %v258_v15  ;;  %v261_v23 = vld [vmem:[#allocation8 + $0x28] sm:$0xff]  ;;  %v138_v25 = vld [vmem:[#allocation5 + $0x50] sm:$0xff] }
  0x84   :  { %v260_v22 = vld [vmem:[#allocation8 + $0x20] sm:$0xff]  ;;  %v2461_v24 = vpack.c.bf16 %v137_v21, %v136_v19  ;;  %v139_v27 = vld [vmem:[#allocation5 + $0x58] sm:$0xff]  ;;  %v262_v28 = vld [vmem:[#allocation8 + $0x30] sm:$0xff]  ;;  %p3045_p3 = por %p3044_p2, %p3043_p1 }
  0x85   :  { %2479 = vmatpush3.bf16.msra.mxu1 %v3246_v16  ;;  %v3253_v26 = vpack.c.bf16 %v261_v23, %v260_v22  ;;  %v263_v29 = vld [vmem:[#allocation8 + $0x38] sm:$0xff]  ;;  %v2465_v30 = vpack.c.bf16 %v139_v27, %v138_v25  ;;  %v140_v31 = vld [vmem:[#allocation5 + $0x60] sm:$0xff]  ;;  %v141_v33 = vld [vmem:[#allocation5 + $0x68] sm:$0xff] }
  0x86   :  { %2452 = vmatpush3.bf16.msra.mxu0 %v2449_v6  ;;  %2480 = vmatprep.subr.bf16.mxu1 %v3081_v0  ;;  %v3257_v32 = vpack.c.bf16 %v263_v29, %v262_v28  ;;  %v264_v34 = vld [vmem:[#allocation8 + $0x40] sm:$0xff]  ;;  %v265_v35 = vld [vmem:[#allocation8 + $0x48] sm:$0xff]  ;;  %v2469_v36 = vpack.c.bf16 %v141_v33, %v140_v31  ;;  %v142_v37 = vld [vmem:[#allocation5 + $0x70] sm:$0xff]  ;;  %p3046_p4 = pnand %p3045_p3, %p3039_p0 }
  0x87   :  { %2454 = vmatprep.subr.bf16.mxu0 %v2453_v9  ;;  %v3261_v38 = vpack.c.bf16 %v265_v35, %v264_v34  ;;  %v143_v39 = vld [vmem:[#allocation5 + $0x78] sm:$0xff]  ;;  %v266_v40 = vld [vmem:[#allocation8 + $0x50] sm:$0xff]  ;;  %v268_v44 = vld [vmem:[#allocation8 + $0x60] sm:$0xff] }
  0x88   :  { %v267_v41 = vld [vmem:[#allocation8 + $0x58] sm:$0xff]  ;;  %v2473_v42 = vpack.c.bf16 %v143_v39, %v142_v37  ;;  %v269_v45 = vld [vmem:[#allocation8 + $0x68] sm:$0xff]  ;;  %v270_v48 = vld [vmem:[#allocation8 + $0x70] sm:$0xff] }
  0x89   :  { %2482 = vmatpush3.bf16.msra.mxu1 %v3249_v20  ;;  %v3265_v43 = vpack.c.bf16 %v267_v41, %v266_v40  ;;  %v3269_v46 = vpack.c.bf16 %v269_v45, %v268_v44  ;;  %v121_v47 = vld [vmem:[#allocation2 + $0x8] sm:$0xff]  ;;  %v271_v49 = vld [vmem:[#allocation8 + $0x78] sm:$0xff]  ;;  %v122_v52 = vld [vmem:[#allocation2 + $0x10] sm:$0xff] }
  0x8a   :  { %2456 = vmatpush3.bf16.msra.mxu0 %v2453_v9  ;;  %2483 = vmatprep.subr.bf16.mxu1 %v3081_v0  ;;  %v3289_v50 = vpack.c.bf16 %v271_v49, %v270_v48  ;;  %v123_v53 = vld [vmem:[#allocation2 + $0x18] sm:$0xff]  ;;  %v124_v54 = vld [vmem:[#allocation2 + $0x20] sm:$0xff]  ;;  %v125_v55 = vld [vmem:[#allocation2 + $0x28] sm:$0xff] }
  0x8b   :  { %2458 = vmatprep.subr.bf16.mxu0 %v2457_v18  ;;  %v126_v56 = vld [vmem:[#allocation2 + $0x30] sm:$0xff]  ;;  %v127_v57 = vld [vmem:[#allocation2 + $0x38] sm:$0xff]  ;;  %v3299_v58 = vld [vmem:[#allocation10] ss:$0 sm:$0xff] }
  0x8c   :  { %v772_v31 = vld [vmem:[#allocation7 + $0x10] sm:$0xff]  ;;  %v774_v37 = vld [vmem:[#allocation7 + $0x20] sm:$0xff]  ;;  %v777_v41 = vld [vmem:[#allocation7 + $0x38] sm:$0xff] }
  0x8d   :  { %2485 = vmatpush3.bf16.msra.mxu1 %v3253_v26  ;;  %v776_v40 = vld [vmem:[#allocation7 + $0x30] sm:$0xff]  ;;  %v779_v44 = vld [vmem:[#allocation7 + $0x48] sm:$0xff]  ;;  %v782_v49 = vld [vmem:[#allocation7 + $0x60] sm:$0xff] }
  0x8e   :  { %2460 = vmatpush3.bf16.msra.mxu0 %v2457_v18  ;;  %2486 = vmatprep.subr.bf16.mxu1 %v3081_v0 }
  0x8f   :  { %2462 = vmatprep.subr.bf16.mxu0 %v2461_v24 }
  0x91   :  { %2488 = vmatpush3.bf16.msra.mxu1 %v3257_v32 }
  0x92   :  { %2464 = vmatpush3.bf16.msra.mxu0 %v2461_v24  ;;  %2489 = vmatprep.subr.bf16.mxu1 %v3081_v0 }
  0x93   :  { %2466 = vmatprep.subr.bf16.mxu0 %v2465_v30 }
  0x95   :  { %2491 = vmatpush3.bf16.msra.mxu1 %v3261_v38 }
  0x96   :  { %2468 = vmatpush3.bf16.msra.mxu0 %v2465_v30  ;;  %2492 = vmatprep.subr.bf16.mxu1 %v3081_v0 }
  0x97   :  { %2470 = vmatprep.subr.bf16.mxu0 %v2469_v36 }
  0x99   :  { %2494 = vmatpush3.bf16.msra.mxu1 %v3265_v43 }
  0x9a   :  { %2472 = vmatpush3.bf16.msra.mxu0 %v2469_v36  ;;  %2495 = vmatprep.subr.bf16.mxu1 %v3081_v0 }
  0x9b   :  { %2474 = vmatprep.subr.bf16.mxu0 %v2473_v42 }
  0x9d   :  { %2497 = vmatpush3.bf16.msra.mxu1 %v3269_v46 }
  0x9e   :  { %2476 = vmatpush3.bf16.msra.mxu0 %v2473_v42  ;;  %2498 = vmatprep.subr.bf16.mxu1 %v3081_v0  ;;  %v2657_v42 = vpack.c.bf16 %v777_v41, %v776_v40 }
  0x9f   :  { %2501 = vmatprep.subr.bf16.mxu0 %v3081_v0 }
  0xa1   :  { %1865 = vmatmul.mubr.f32.vlgmr.msra.gmra.mrb[0].mxu0 %v121_v47  ;;  %2500 = vmatpush3.bf16.msra.mxu1 %v3289_v50  ;;  %v781_v47 = vld [vmem:[#allocation7 + $0x58] sm:$0xff] }
  0xa2   :  { %2503 = vmatpush3.bf16.msra.mxu0 %v3246_v16  ;;  %2525 = vmatprep.subr.bf16.mxu1 %v3081_v0 }
  0xa3   :  { %2504 = vmatprep.subr.bf16.mxu0 %v3081_v0  ;;  %1867 = vmatprep.mubr.f32.mxu0 %v122_v52 }
  0xa5   :  { %1868 = vmatmul.mubr.f32.gmra.mrb[2].mxu0 %v123_v53  ;;  %v784_v53 = vld [vmem:[#allocation7 + $0x70] sm:$0xff] }
  0xa6   :  { %2506 = vmatpush3.bf16.msra.mxu0 %v3249_v20  ;;  %1870 = vmatprep.mubr.f32.mxu0 %v124_v54  ;;  %v785_v54 = vld [vmem:[#allocation7 + $0x78] sm:$0xff] }
  0xa7   :  { %2507 = vmatprep.subr.bf16.mxu0 %v3081_v0 }
  0xa9   :  { %1871 = vmatmul.mubr.f32.gmra.mrb[4].mxu0 %v125_v55  ;;  %v2673_v55 = vpack.c.bf16 %v785_v54, %v784_v53 }
  0xaa   :  { %2509 = vmatpush3.bf16.msra.mxu0 %v3253_v26  ;;  %1873 = vmatprep.mubr.f32.mxu0 %v126_v56  ;;  %v900_v56 = vld [vmem:[#allocation8 + $0x80] sm:$0xff] }
  0xab   :  { %2510 = vmatprep.subr.bf16.mxu0 %v3081_v0 }
  0xad   :  { %1874 = vmatmul.mubr.f32.gmra.mrb[6].mxu0 %v127_v57  ;;  %v901_v57 = vld [vmem:[#allocation8 + $0x88] sm:$0xff] }
  0xae   :  { %2512 = vmatpush3.bf16.msra.mxu0 %v3257_v32  ;;  %1943 = vmatprep.mubr.msk.f32.mxu0 %vm3082_vm0, %v3083_v51 }
  0xaf   :  { %2513 = vmatprep.subr.bf16.mxu0 %v3081_v0 }
  0xb2   :  { %2515 = vmatpush3.bf16.msra.mxu0 %v3261_v38 }
  0xb3   :  { %2516 = vmatprep.subr.bf16.mxu0 %v3081_v0 }
  0xb6   :  { %2518 = vmatpush3.bf16.msra.mxu0 %v3265_v43 }
  0xb7   :  { %2519 = vmatprep.subr.bf16.mxu0 %v3081_v0 }
  0xba   :  { %2521 = vmatpush3.bf16.msra.mxu0 %v3269_v46 }
  0xbb   :  { %2522 = vmatprep.subr.bf16.mxu0 %v3081_v0 }
  0xbe   :  { %2524 = vmatpush3.bf16.msra.mxu0 %v3289_v50 }
  0xbf   :  { %2549 = vmatprep.subr.bf16.mxu0 %v3081_v0 }
 0x174   :  { %v1866_v59 = vpop.f32.mrb[0].mxu0 }
 0x175   :  { %v217_v60 = vpop.f32.mrb[1].mxu0  ;;  %v223_v6 = vadd.f32 %v1866_v59, %v3299_v58  ;;  %v3442_v59 = vpack.c.bf16 %v901_v57, %v900_v56 }
 0x176   :  { %v3302_v61 = vadd.f32 %v3299_v58, %v217_v60  ;;  %v902_v60 = vld [vmem:[#allocation8 + $0x90] sm:$0xff] }
 0x178   :  { %v272_v62 = vmax.f32 %v3302_v61, 0.0  ;;  %v1869_v63 = vpop.f32.mrb[2].mxu0  ;;  %v903_v61 = vld [vmem:[#allocation8 + $0x98] sm:$0xff] }
 0x179   :  { %v227_v1 = vpop.f32.mrb[3].mxu0  ;;  %v233_v17 = vadd.f32 %v1869_v63, %v3299_v58  ;;  %v904_v63 = vld [vmem:[#allocation8 + $0xa0] sm:$0xff] }
 0x17a   :  { %1909 = vmatmul.mubr.f32.vlgmr.msra.gmra.mrb[0].mxu1 %v272_v62  ;;  %v228_v11 = vadd.f32 %v3299_v58, %v227_v1  ;;  %v905_v1 = vld [vmem:[#allocation8 + $0xa8] sm:$0xff] }
 0x17b   :  { %2527 = vmatpush3.bf16.msra.mxu1 %v3246_v16  ;;  %1978 = vmatprep.mubr.msk.f32.mxu1 %vm3082_vm0, %v3083_v51 }
 0x17c   :  { %2528 = vmatprep.subr.bf16.mxu1 %v3081_v0  ;;  %v3325_v2 = vpop.f32.mrb[4].mxu0 }
 0x17d   :  { %v3327_v3 = vpop.f32.mrb[5].mxu0  ;;  %v243_v29 = vadd.f32 %v3325_v2, %v3299_v58  ;;  %v3450_v2 = vpack.c.bf16 %v905_v1, %v904_v63 }
 0x17e   :  { %v238_v23 = vadd.f32 %v3299_v58, %v3327_v3  ;;  %v906_v3 = vld [vmem:[#allocation8 + $0xb0] sm:$0xff] }
 0x17f   :  { %2530 = vmatpush3.bf16.msra.mxu1 %v3249_v20 }
 0x180   :  { %2531 = vmatprep.subr.bf16.mxu1 %v3081_v0  ;;  %v3329_v4 = vpop.f32.mrb[6].mxu0 }
 0x181   :  { %v3331_v5 = vpop.f32.mrb[7].mxu0 }
 0x183   :  { %2533 = vmatpush3.bf16.msra.mxu1 %v3253_v26 }
 0x184   :  { %2534 = vmatprep.subr.bf16.mxu1 %v3081_v0 }
 0x187   :  { %2536 = vmatpush3.bf16.msra.mxu1 %v3257_v32 }
 0x188   :  { %2537 = vmatprep.subr.bf16.mxu1 %v3081_v0 }
 0x18b   :  { %2539 = vmatpush3.bf16.msra.mxu1 %v3261_v38 }
 0x18c   :  { %2540 = vmatprep.subr.bf16.mxu1 %v3081_v0 }
 0x18f   :  { %2542 = vmatpush3.bf16.msra.mxu1 %v3265_v43 }
 0x190   :  { %2543 = vmatprep.subr.bf16.mxu1 %v3081_v0 }
 0x193   :  { %2545 = vmatpush3.bf16.msra.mxu1 %v3269_v46 }
 0x194   :  { %2546 = vmatprep.subr.bf16.mxu1 %v3081_v0 }
 0x197   :  { %2548 = vmatpush3.bf16.msra.mxu1 %v3289_v50 }
 0x198   :  { %2573 = vmatprep.subr.bf16.mxu1 %v3081_v0 }
 0x24d   :  { %v339_v7 = vpop.f32.mrb[0].mxu1 }
 0x24e   :  { %v3334_v8 = vadd.f32 %v339_v7, %v223_v6  ;;  %v1910_v9 = vpop.f32.mrb[1].mxu1  ;;  %v907_v6 = vld [vmem:[#allocation8 + $0xb8] sm:$0xff] }
 0x24f   :  { %v3454_v7 = vpack.c.bf16 %v907_v6, %v906_v3  ;;  %v909_v9 = vld [vmem:[#allocation8 + $0xc8] sm:$0xff]  ;;  %v1416_v6 = vld [vmem:[#allocation11 + $0x10] sm:$0xff] }
 0x250   :  { %v343_v10 = vmax.f32 %v3334_v8, 0.0  ;;  %v908_v8 = vld [vmem:[#allocation8 + $0xc0] sm:$0xff]  ;;  %v1415_v3 = vld [vmem:[#allocation11 + $0x8] sm:$0xff] }
 0x252   :  { %1944 = vmatmul.mubr.f32.vlgmr.msra.gmra.mrb[8].mxu0 %v343_v10 }
 0x253   :  { %2551 = vmatpush3.bf16.msra.mxu0 %v3246_v16  ;;  %2013 = vmatprep.mubr.msk.f32.mxu0 %vm3082_vm0, %v3083_v51 }
 0x254   :  { %2552 = vmatprep.subr.bf16.mxu0 %v3081_v0 }
 0x257   :  { %2554 = vmatpush3.bf16.msra.mxu0 %v3249_v20 }
 0x258   :  { %2555 = vmatprep.subr.bf16.mxu0 %v3081_v0 }
 0x25b   :  { %2557 = vmatpush3.bf16.msra.mxu0 %v3253_v26 }
 0x25c   :  { %2558 = vmatprep.subr.bf16.mxu0 %v3081_v0 }
 0x25f   :  { %2560 = vmatpush3.bf16.msra.mxu0 %v3257_v32 }
 0x260   :  { %2561 = vmatprep.subr.bf16.mxu0 %v3081_v0 }
 0x263   :  { %2563 = vmatpush3.bf16.msra.mxu0 %v3261_v38 }
 0x264   :  { %2564 = vmatprep.subr.bf16.mxu0 %v3081_v0 }
 0x267   :  { %2566 = vmatpush3.bf16.msra.mxu0 %v3265_v43 }
 0x268   :  { %2567 = vmatprep.subr.bf16.mxu0 %v3081_v0 }
 0x26b   :  { %2569 = vmatpush3.bf16.msra.mxu0 %v3269_v46 }
 0x26c   :  { %2570 = vmatprep.subr.bf16.mxu0 %v3081_v0 }
 0x26f   :  { %2572 = vmatpush3.bf16.msra.mxu0 %v3289_v50 }
 0x270   :  { %2597 = vmatprep.subr.bf16.mxu0 %v3081_v0 }
 0x325   :  { %v410_v12 = vpop.f32.mrb[8].mxu0 }
 0x326   :  { %v3358_v13 = vadd.f32 %v410_v12, %v228_v11  ;;  %v1945_v14 = vpop.f32.mrb[9].mxu0  ;;  %v910_v11 = vld [vmem:[#allocation8 + $0xd0] sm:$0xff]  ;;  %v911_v12 = vld [vmem:[#allocation8 + $0xd8] sm:$0xff] }
 0x327   :  { %v912_v14 = vld [vmem:[#allocation8 + $0xe0] sm:$0xff] }
 0x328   :  { %v414_v15 = vmax.f32 %v3358_v13, 0.0  ;;  %v3462_v13 = vpack.c.bf16 %v911_v12, %v910_v11  ;;  %v1419_v11 = vld [vmem:[#allocation11 + $0x28] sm:$0xff] }
 0x32a   :  { %1979 = vmatmul.mubr.f32.vlgmr.msra.gmra.mrb[2].mxu1 %v414_v15 }
 0x32b   :  { %2575 = vmatpush3.bf16.msra.mxu1 %v3246_v16  ;;  %2048 = vmatprep.mubr.msk.f32.mxu1 %vm3082_vm0, %v3083_v51 }
 0x32c   :  { %2576 = vmatprep.subr.bf16.mxu1 %v3081_v0 }
 0x32f   :  { %2578 = vmatpush3.bf16.msra.mxu1 %v3249_v20 }
 0x330   :  { %2579 = vmatprep.subr.bf16.mxu1 %v3081_v0 }
 0x333   :  { %2581 = vmatpush3.bf16.msra.mxu1 %v3253_v26 }
 0x334   :  { %2582 = vmatprep.subr.bf16.mxu1 %v3081_v0 }
 0x337   :  { %2584 = vmatpush3.bf16.msra.mxu1 %v3257_v32 }
 0x338   :  { %2585 = vmatprep.subr.bf16.mxu1 %v3081_v0 }
 0x33b   :  { %2587 = vmatpush3.bf16.msra.mxu1 %v3261_v38 }
 0x33c   :  { %2588 = vmatprep.subr.bf16.mxu1 %v3081_v0 }
 0x33f   :  { %2590 = vmatpush3.bf16.msra.mxu1 %v3265_v43 }
 0x340   :  { %2591 = vmatprep.subr.bf16.mxu1 %v3081_v0 }
 0x343   :  { %2593 = vmatpush3.bf16.msra.mxu1 %v3269_v46 }
 0x344   :  { %2594 = vmatprep.subr.bf16.mxu1 %v3081_v0 }
 0x347   :  { %2596 = vmatpush3.bf16.msra.mxu1 %v3289_v50 }
 0x348   :  { %2621 = vmatprep.subr.bf16.mxu1 %v3081_v0 }
 0x3fd   :  { %v481_v18 = vpop.f32.mrb[2].mxu1 }
 0x3fe   :  { %v3382_v19 = vadd.f32 %v481_v18, %v233_v17  ;;  %v1980_v21 = vpop.f32.mrb[3].mxu1  ;;  %v914_v18 = vld [vmem:[#allocation8 + $0xf0] sm:$0xff] }
 0x400   :  { %v485_v22 = vmax.f32 %v3382_v19, 0.0  ;;  %v915_v19 = vld [vmem:[#allocation8 + $0xf8] sm:$0xff] }
 0x401   :  { %v3470_v21 = vpack.c.bf16 %v915_v19, %v914_v18  ;;  %v1424_v19 = vld [vmem:[#allocation11 + $0x50] sm:$0xff] }
 0x402   :  { %2014 = vmatmul.mubr.f32.vlgmr.msra.gmra.mrb[10].mxu0 %v485_v22 }
 0x403   :  { %2599 = vmatpush3.bf16.msra.mxu0 %v3246_v16  ;;  %2083 = vmatprep.mubr.msk.f32.mxu0 %vm3082_vm0, %v3083_v51 }
 0x404   :  { %2600 = vmatprep.subr.bf16.mxu0 %v3081_v0 }
 0x407   :  { %2602 = vmatpush3.bf16.msra.mxu0 %v3249_v20 }
 0x408   :  { %2603 = vmatprep.subr.bf16.mxu0 %v3081_v0 }
 0x40b   :  { %2605 = vmatpush3.bf16.msra.mxu0 %v3253_v26 }
 0x40c   :  { %2606 = vmatprep.subr.bf16.mxu0 %v3081_v0 }
 0x40f   :  { %2608 = vmatpush3.bf16.msra.mxu0 %v3257_v32 }
 0x410   :  { %2609 = vmatprep.subr.bf16.mxu0 %v3081_v0 }
 0x413   :  { %2611 = vmatpush3.bf16.msra.mxu0 %v3261_v38 }
 0x414   :  { %2612 = vmatprep.subr.bf16.mxu0 %v3081_v0 }
 0x417   :  { %2614 = vmatpush3.bf16.msra.mxu0 %v3265_v43 }
 0x418   :  { %2615 = vmatprep.subr.bf16.mxu0 %v3081_v0 }
 0x41b   :  { %2617 = vmatpush3.bf16.msra.mxu0 %v3269_v46 }
 0x41c   :  { %2618 = vmatprep.subr.bf16.mxu0 %v3081_v0 }
 0x41f   :  { %2620 = vmatpush3.bf16.msra.mxu0 %v3289_v50 }
 0x4d5   :  { %v552_v24 = vpop.f32.mrb[10].mxu0 }
 0x4d6   :  { %v3406_v25 = vadd.f32 %v552_v24, %v238_v23  ;;  %v2015_v27 = vpop.f32.mrb[11].mxu0 }
 0x4d8   :  { %v556_v28 = vmax.f32 %v3406_v25, 0.0 }
 0x4da   :  { %2049 = vmatmul.mubr.f32.vlgmr.msra.gmra.mrb[4].mxu1 %v556_v28 }
 0x4db   :  { %2623 = vmatpush3.bf16.msra.mxu1 %v3246_v16  ;;  %2118 = vmatprep.mubr.msk.f32.mxu1 %vm3082_vm0, %v3083_v51  ;;  %v770_v16 = vld [vmem:[#allocation7] sm:$0xff] }
 0x4dc   :  { %2624 = vmatprep.subr.bf16.mxu1 %v3081_v0 }
 0x4df   :  { %2626 = vmatpush3.bf16.msra.mxu1 %v3249_v20  ;;  %v771_v20 = vld [vmem:[#allocation7 + $0x8] sm:$0xff] }
 0x4e0   :  { %2627 = vmatprep.subr.bf16.mxu1 %v3081_v0 }
 0x4e3   :  { %2629 = vmatpush3.bf16.msra.mxu1 %v3253_v26  ;;  %v2645_v26 = vpack.c.bf16 %v771_v20, %v770_v16 }
 0x4e4   :  { %2630 = vmatprep.subr.bf16.mxu1 %v3081_v0 }
 0x4e5   :  { %2646 = vmatprep.subr.bf16.mxu0 %v2645_v26 }
 0x4e7   :  { %2632 = vmatpush3.bf16.msra.mxu1 %v3257_v32  ;;  %v773_v32 = vld [vmem:[#allocation7 + $0x18] sm:$0xff] }
 0x4e8   :  { %2633 = vmatprep.subr.bf16.mxu1 %v3081_v0  ;;  %v2649_v36 = vpack.c.bf16 %v773_v32, %v772_v31 }
 0x4eb   :  { %2635 = vmatpush3.bf16.msra.mxu1 %v3261_v38  ;;  %v775_v38 = vld [vmem:[#allocation7 + $0x28] sm:$0xff] }
 0x4ec   :  { %2636 = vmatprep.subr.bf16.mxu1 %v3081_v0  ;;  %v2653_v39 = vpack.c.bf16 %v775_v38, %v774_v37 }
 0x4ef   :  { %2638 = vmatpush3.bf16.msra.mxu1 %v3265_v43  ;;  %v778_v43 = vld [vmem:[#allocation7 + $0x40] sm:$0xff] }
 0x4f0   :  { %2639 = vmatprep.subr.bf16.mxu1 %v3081_v0  ;;  %v2661_v45 = vpack.c.bf16 %v779_v44, %v778_v43 }
 0x4f3   :  { %2641 = vmatpush3.bf16.msra.mxu1 %v3269_v46  ;;  %v780_v46 = vld [vmem:[#allocation7 + $0x50] sm:$0xff] }
 0x4f4   :  { %2642 = vmatprep.subr.bf16.mxu1 %v3081_v0  ;;  %v2665_v48 = vpack.c.bf16 %v781_v47, %v780_v46 }
 0x4f7   :  { %2644 = vmatpush3.bf16.msra.mxu1 %v3289_v50  ;;  %v783_v50 = vld [vmem:[#allocation7 + $0x68] sm:$0xff] }
 0x4f8   :  { %2677 = vmatprep.subr.bf16.mxu1 %v3081_v0  ;;  %v2669_v52 = vpack.c.bf16 %v783_v50, %v782_v49 }
 0x5ad   :  { %v623_v30 = vpop.f32.mrb[4].mxu1 }
 0x5ae   :  { %v624_v33 = vadd.f32 %v623_v30, %v243_v29  ;;  %v2050_v34 = vpop.f32.mrb[5].mxu1 }
 0x5b0   :  { %v627_v35 = vmax.f32 %v624_v33, 0.0  ;;  %v253_v33 = vadd.f32 %v3329_v4, %v3299_v58 }
 0x5b2   :  { %2084 = vmatmul.mubr.f32.vlgmr.msra.gmra.mrb[12].mxu0 %v627_v35 }
 0x5b3   :  { %2648 = vmatpush3.bf16.msra.mxu0 %v2645_v26  ;;  %2153 = vmatprep.mubr.f32.mxu0 %v272_v62  ;;  %v3446_v62 = vpack.c.bf16 %v903_v61, %v902_v60 }
 0x5b4   :  { %2650 = vmatprep.subr.bf16.mxu0 %v2649_v36 }
 0x5b7   :  { %2652 = vmatpush3.bf16.msra.mxu0 %v2649_v36 }
 0x5b8   :  { %2654 = vmatprep.subr.bf16.mxu0 %v2653_v39 }
 0x5bb   :  { %2656 = vmatpush3.bf16.msra.mxu0 %v2653_v39 }
 0x5bc   :  { %2658 = vmatprep.subr.bf16.mxu0 %v2657_v42 }
 0x5bf   :  { %2660 = vmatpush3.bf16.msra.mxu0 %v2657_v42 }
 0x5c0   :  { %2662 = vmatprep.subr.bf16.mxu0 %v2661_v45 }
 0x5c3   :  { %2664 = vmatpush3.bf16.msra.mxu0 %v2661_v45 }
 0x5c4   :  { %2666 = vmatprep.subr.bf16.mxu0 %v2665_v48 }
 0x5c7   :  { %2668 = vmatpush3.bf16.msra.mxu0 %v2665_v48 }
 0x5c8   :  { %2670 = vmatprep.subr.bf16.mxu0 %v2669_v52 }
 0x5cb   :  { %2672 = vmatpush3.bf16.msra.mxu0 %v2669_v52 }
 0x5cc   :  { %2674 = vmatprep.subr.bf16.mxu0 %v2673_v55 }
 0x5cf   :  { %2676 = vmatpush3.bf16.msra.mxu0 %v2673_v55 }
 0x5d0   :  { %2701 = vmatprep.subr.bf16.mxu0 %v3081_v0 }
 0x5d2   :  { %2154 = vmatmul.mubr.f32.vlgmr.msra.gmra.mrb[14].mxu0 %v343_v10  ;;  %v3458_v10 = vpack.c.bf16 %v909_v9, %v908_v8  ;;  %v1417_v8 = vld [vmem:[#allocation11 + $0x18] sm:$0xff] }
 0x5d3   :  { %2156 = vmatprep.mubr.f32.mxu0 %v414_v15  ;;  %2703 = vmatpush3.bf16.msra.mxu0 %v3442_v59  ;;  %v913_v15 = vld [vmem:[#allocation8 + $0xe8] sm:$0xff]  ;;  %v2849_v9 = vpack.c.bf16 %v1417_v8, %v1416_v6 }
 0x5d4   :  { %2704 = vmatprep.subr.bf16.mxu0 %v3081_v0  ;;  %v3466_v17 = vpack.c.bf16 %v913_v15, %v912_v14  ;;  %v1421_v14 = vld [vmem:[#allocation11 + $0x38] sm:$0xff] }
 0x5d6   :  { %2157 = vmatmul.mubr.f32.gmra.mrb[16].mxu0 %v485_v22  ;;  %v248_v22 = vadd.f32 %v3299_v58, %v3331_v5  ;;  %v3491_v5 = vld [vmem:[#allocation10 + $0x1] ss:$0 sm:$0xff] }
 0x5d7   :  { %2159 = vmatprep.mubr.f32.mxu0 %v556_v28  ;;  %2706 = vmatpush3.bf16.msra.mxu0 %v3446_v62 }
 0x5d8   :  { %2707 = vmatprep.subr.bf16.mxu0 %v3081_v0 }
 0x5da   :  { %2160 = vmatmul.mubr.f32.gmra.mrb[18].mxu0 %v627_v35 }
 0x5db   :  { %2709 = vmatpush3.bf16.msra.mxu0 %v3450_v2 }
 0x5dc   :  { %2710 = vmatprep.subr.bf16.mxu0 %v3081_v0 }
 0x5df   :  { %2712 = vmatpush3.bf16.msra.mxu0 %v3454_v7 }
 0x5e0   :  { %2713 = vmatprep.subr.bf16.mxu0 %v3081_v0 }
 0x5e3   :  { %2715 = vmatpush3.bf16.msra.mxu0 %v3458_v10 }
 0x5e4   :  { %2716 = vmatprep.subr.bf16.mxu0 %v3081_v0 }
 0x5e7   :  { %2718 = vmatpush3.bf16.msra.mxu0 %v3462_v13 }
 0x5e8   :  { %2719 = vmatprep.subr.bf16.mxu0 %v3081_v0 }
 0x5eb   :  { %2721 = vmatpush3.bf16.msra.mxu0 %v3466_v17 }
 0x5ec   :  { %2722 = vmatprep.subr.bf16.mxu0 %v3081_v0 }
 0x5ef   :  { %2724 = vmatpush3.bf16.msra.mxu0 %v3470_v21 }
 0x5f0   :  { %2749 = vmatprep.subr.bf16.mxu0 %v3081_v0 }
 0x685   :  { %v694_v23 = vpop.f32.mrb[12].mxu0 }
 0x686   :  { %v695_v24 = vadd.f32 %v694_v23, %v248_v22  ;;  %v2085_v25 = vpop.f32.mrb[13].mxu0  ;;  %v1426_v23 = vld [vmem:[#allocation11 + $0x60] sm:$0xff] }
 0x688   :  { %v698_v27 = vmax.f32 %v695_v24, 0.0  ;;  %v1427_v24 = vld [vmem:[#allocation11 + $0x68] sm:$0xff] }
 0x689   :  { %v2864_v25 = vpack.c.bf16 %v1427_v24, %v1426_v23 }
 0x68a   :  { %2119 = vmatmul.mubr.f32.vlgmr.msra.gmra.mrb[6].mxu1 %v698_v27  ;;  %2162 = vmatprep.mubr.f32.mxu0 %v698_v27 }
 0x68b   :  { %2679 = vmatpush3.bf16.msra.mxu1 %v3442_v59  ;;  %2197 = vmatprep.mubr.msk.f32.mxu1 %vm3082_vm0, %v3083_v51 }
 0x68c   :  { %2680 = vmatprep.subr.bf16.mxu1 %v3081_v0 }
 0x68f   :  { %2682 = vmatpush3.bf16.msra.mxu1 %v3446_v62 }
 0x690   :  { %2683 = vmatprep.subr.bf16.mxu1 %v3081_v0 }
 0x693   :  { %2685 = vmatpush3.bf16.msra.mxu1 %v3450_v2 }
 0x694   :  { %2686 = vmatprep.subr.bf16.mxu1 %v3081_v0 }
 0x697   :  { %2688 = vmatpush3.bf16.msra.mxu1 %v3454_v7 }
 0x698   :  { %2689 = vmatprep.subr.bf16.mxu1 %v3081_v0 }
 0x69b   :  { %2691 = vmatpush3.bf16.msra.mxu1 %v3458_v10 }
 0x69c   :  { %2692 = vmatprep.subr.bf16.mxu1 %v3081_v0 }
 0x69f   :  { %2694 = vmatpush3.bf16.msra.mxu1 %v3462_v13 }
 0x6a0   :  { %2695 = vmatprep.subr.bf16.mxu1 %v3081_v0 }
 0x6a3   :  { %2697 = vmatpush3.bf16.msra.mxu1 %v3466_v17 }
 0x6a4   :  { %2698 = vmatprep.subr.bf16.mxu1 %v3081_v0 }
 0x6a5   :  { %v2155_v28 = vpop.f32.mrb[14].mxu0 }
 0x6a6   :  { %v860_v16 = vpop.f32.mrb[15].mxu0  ;;  %v866_v38 = vadd.f32 %v2155_v28, %v3491_v5 }
 0x6a7   :  { %v861_v20 = vadd.f32 %v3491_v5, %v860_v16  ;;  %2700 = vmatpush3.bf16.msra.mxu1 %v3470_v21 }
 0x6a8   :  { %2725 = vmatprep.subr.bf16.mxu1 %v3081_v0 }
 0x6a9   :  { %v916_v26 = vmax.f32 %v861_v20, 0.0  ;;  %v3497_v29 = vpop.f32.mrb[16].mxu0 }
 0x6aa   :  { %v870_v30 = vpop.f32.mrb[17].mxu0  ;;  %v876_v48 = vadd.f32 %v3497_v29, %v3491_v5  ;;  %v1428_v29 = vld [vmem:[#allocation11 + $0x70] sm:$0xff] }
 0x6ab   :  { %2198 = vmatmul.mubr.f32.vlgmr.msra.gmra.mrb[8].mxu1 %v916_v26  ;;  %v871_v43 = vadd.f32 %v3491_v5, %v870_v30  ;;  %v1429_v30 = vld [vmem:[#allocation11 + $0x78] sm:$0xff] }
 0x6ac   :  { %2727 = vmatpush3.bf16.msra.mxu1 %v3442_v59  ;;  %2267 = vmatprep.mubr.msk.f32.mxu1 %vm3082_vm0, %v3083_v51 }
 0x6ad   :  { %v3502_v31 = vpop.f32.mrb[18].mxu0  ;;  %2728 = vmatprep.subr.bf16.mxu1 %v3081_v0 }
 0x6ae   :  { %v3505_v32 = vpop.f32.mrb[19].mxu0 }
 0x6af   :  { %v881_v54 = vadd.f32 %v3491_v5, %v3505_v32 }
 0x6b0   :  { %2730 = vmatpush3.bf16.msra.mxu1 %v3446_v62 }
 0x6b1   :  { %2731 = vmatprep.subr.bf16.mxu1 %v3081_v0 }
 0x6b4   :  { %2733 = vmatpush3.bf16.msra.mxu1 %v3450_v2 }
 0x6b5   :  { %2734 = vmatprep.subr.bf16.mxu1 %v3081_v0 }
 0x6b8   :  { %2736 = vmatpush3.bf16.msra.mxu1 %v3454_v7 }
 0x6b9   :  { %2737 = vmatprep.subr.bf16.mxu1 %v3081_v0 }
 0x6bc   :  { %2739 = vmatpush3.bf16.msra.mxu1 %v3458_v10 }
 0x6bd   :  { %2740 = vmatprep.subr.bf16.mxu1 %v3081_v0 }
 0x6c0   :  { %2742 = vmatpush3.bf16.msra.mxu1 %v3462_v13 }
 0x6c1   :  { %2743 = vmatprep.subr.bf16.mxu1 %v3081_v0 }
 0x6c4   :  { %2745 = vmatpush3.bf16.msra.mxu1 %v3466_v17 }
 0x6c5   :  { %2746 = vmatprep.subr.bf16.mxu1 %v3081_v0 }
 0x6c8   :  { %2748 = vmatpush3.bf16.msra.mxu1 %v3470_v21 }
 0x6c9   :  { %2773 = vmatprep.subr.bf16.mxu1 %v3081_v0 }
 0x75d   :  { %v765_v34 = vpop.f32.mrb[6].mxu1 }
 0x75e   :  { %v766_v35 = vadd.f32 %v765_v34, %v253_v33  ;;  %v2120_v36 = vpop.f32.mrb[7].mxu1 }
 0x760   :  { %v769_v37 = vmax.f32 %v766_v35, 0.0 }
 0x762   :  { %2163 = vmatmul.mubr.f32.gmra.mrb[20].mxu0 %v769_v37 }
 0x763   :  { %2232 = vmatprep.mubr.msk.f32.mxu0 %vm3082_vm0, %v3083_v51 }
 0x77e   :  { %v983_v39 = vpop.f32.mrb[8].mxu1 }
 0x77f   :  { %v984_v40 = vadd.f32 %v983_v39, %v866_v38  ;;  %v2199_v41 = vpop.f32.mrb[9].mxu1 }
 0x781   :  { %v987_v42 = vmax.f32 %v984_v40, 0.0 }
 0x783   :  { %2233 = vmatmul.mubr.f32.vlgmr.msra.gmra.mrb[22].mxu0 %v987_v42 }
 0x784   :  { %2751 = vmatpush3.bf16.msra.mxu0 %v3442_v59  ;;  %2302 = vmatprep.mubr.msk.f32.mxu0 %vm3082_vm0, %v3083_v51 }
 0x785   :  { %2752 = vmatprep.subr.bf16.mxu0 %v3081_v0 }
 0x788   :  { %2754 = vmatpush3.bf16.msra.mxu0 %v3446_v62 }
 0x789   :  { %2755 = vmatprep.subr.bf16.mxu0 %v3081_v0 }
 0x78c   :  { %2757 = vmatpush3.bf16.msra.mxu0 %v3450_v2 }
 0x78d   :  { %2758 = vmatprep.subr.bf16.mxu0 %v3081_v0 }
 0x790   :  { %2760 = vmatpush3.bf16.msra.mxu0 %v3454_v7 }
 0x791   :  { %2761 = vmatprep.subr.bf16.mxu0 %v3081_v0 }
 0x794   :  { %2763 = vmatpush3.bf16.msra.mxu0 %v3458_v10 }
 0x795   :  { %2764 = vmatprep.subr.bf16.mxu0 %v3081_v0 }
 0x798   :  { %2766 = vmatpush3.bf16.msra.mxu0 %v3462_v13 }
 0x799   :  { %2767 = vmatprep.subr.bf16.mxu0 %v3081_v0 }
 0x79c   :  { %2769 = vmatpush3.bf16.msra.mxu0 %v3466_v17 }
 0x79d   :  { %2770 = vmatprep.subr.bf16.mxu0 %v3081_v0 }
 0x7a0   :  { %2772 = vmatpush3.bf16.msra.mxu0 %v3470_v21 }
 0x7a1   :  { %2797 = vmatprep.subr.bf16.mxu0 %v3081_v0 }
 0x835   :  { %v3544_v58 = vpop.f32.mrb[20].mxu0 }
 0x836   :  { %v3546_v4 = vpop.f32.mrb[21].mxu0  ;;  %v896_v32 = vadd.f32 %v3544_v58, %v3491_v5 }
 0x837   :  { %v891_v27 = vadd.f32 %v3491_v5, %v3546_v4 }
 0x856   :  { %v1054_v44 = vpop.f32.mrb[22].mxu0 }
 0x857   :  { %v1055_v45 = vadd.f32 %v1054_v44, %v871_v43  ;;  %v2234_v46 = vpop.f32.mrb[23].mxu0 }
 0x859   :  { %v1058_v47 = vmax.f32 %v1055_v45, 0.0 }
 0x85b   :  { %2268 = vmatmul.mubr.f32.vlgmr.msra.gmra.mrb[10].mxu1 %v1058_v47 }
 0x85c   :  { %2775 = vmatpush3.bf16.msra.mxu1 %v3442_v59  ;;  %2337 = vmatprep.mubr.msk.f32.mxu1 %vm3082_vm0, %v3083_v51 }
 0x85d   :  { %2776 = vmatprep.subr.bf16.mxu1 %v3081_v0 }
 0x860   :  { %2778 = vmatpush3.bf16.msra.mxu1 %v3446_v62 }
 0x861   :  { %2779 = vmatprep.subr.bf16.mxu1 %v3081_v0 }
 0x864   :  { %2781 = vmatpush3.bf16.msra.mxu1 %v3450_v2 }
 0x865   :  { %2782 = vmatprep.subr.bf16.mxu1 %v3081_v0 }
 0x868   :  { %2784 = vmatpush3.bf16.msra.mxu1 %v3454_v7 }
 0x869   :  { %2785 = vmatprep.subr.bf16.mxu1 %v3081_v0 }
 0x86c   :  { %2787 = vmatpush3.bf16.msra.mxu1 %v3458_v10 }
 0x86d   :  { %2788 = vmatprep.subr.bf16.mxu1 %v3081_v0 }
 0x870   :  { %2790 = vmatpush3.bf16.msra.mxu1 %v3462_v13 }
 0x871   :  { %2791 = vmatprep.subr.bf16.mxu1 %v3081_v0 }
 0x874   :  { %2793 = vmatpush3.bf16.msra.mxu1 %v3466_v17 }
 0x875   :  { %2794 = vmatprep.subr.bf16.mxu1 %v3081_v0 }
 0x878   :  { %2796 = vmatpush3.bf16.msra.mxu1 %v3470_v21 }
 0x879   :  { %2821 = vmatprep.subr.bf16.mxu1 %v3081_v0 }
 0x92e   :  { %v1125_v49 = vpop.f32.mrb[10].mxu1 }
 0x92f   :  { %v1126_v50 = vadd.f32 %v1125_v49, %v876_v48  ;;  %v2269_v52 = vpop.f32.mrb[11].mxu1 }
 0x931   :  { %v1129_v53 = vmax.f32 %v1126_v50, 0.0 }
 0x933   :  { %2303 = vmatmul.mubr.f32.vlgmr.msra.gmra.mrb[24].mxu0 %v1129_v53 }
 0x934   :  { %2799 = vmatpush3.bf16.msra.mxu0 %v3442_v59  ;;  %2372 = vmatprep.mubr.msk.f32.mxu0 %vm3082_vm0, %v3083_v51 }
 0x935   :  { %2800 = vmatprep.subr.bf16.mxu0 %v3081_v0 }
 0x938   :  { %2802 = vmatpush3.bf16.msra.mxu0 %v3446_v62 }
 0x939   :  { %2803 = vmatprep.subr.bf16.mxu0 %v3081_v0 }
 0x93c   :  { %2805 = vmatpush3.bf16.msra.mxu0 %v3450_v2 }
 0x93d   :  { %2806 = vmatprep.subr.bf16.mxu0 %v3081_v0 }
 0x940   :  { %2808 = vmatpush3.bf16.msra.mxu0 %v3454_v7 }
 0x941   :  { %2809 = vmatprep.subr.bf16.mxu0 %v3081_v0 }
 0x944   :  { %2811 = vmatpush3.bf16.msra.mxu0 %v3458_v10 }
 0x945   :  { %2812 = vmatprep.subr.bf16.mxu0 %v3081_v0 }
 0x948   :  { %2814 = vmatpush3.bf16.msra.mxu0 %v3462_v13 }
 0x949   :  { %2815 = vmatprep.subr.bf16.mxu0 %v3081_v0 }
 0x94c   :  { %2817 = vmatpush3.bf16.msra.mxu0 %v3466_v17 }
 0x94d   :  { %2818 = vmatprep.subr.bf16.mxu0 %v3081_v0 }
 0x950   :  { %2820 = vmatpush3.bf16.msra.mxu0 %v3470_v21 }
 0x951   :  { %2845 = vmatprep.subr.bf16.mxu0 %v3081_v0 }
 0xa06   :  { %v1196_v55 = vpop.f32.mrb[24].mxu0 }
 0xa07   :  { %v1197_v56 = vadd.f32 %v1196_v55, %v881_v54  ;;  %v2304_v57 = vpop.f32.mrb[25].mxu0 }
 0xa09   :  { %v1200_v60 = vmax.f32 %v1197_v56, 0.0 }
 0xa0b   :  { %2338 = vmatmul.mubr.f32.vlgmr.msra.gmra.mrb[12].mxu1 %v1200_v60 }
 0xa0c   :  { %2823 = vmatpush3.bf16.msra.mxu1 %v3442_v59  ;;  %2407 = vmatprep.mubr.msk.f32.mxu1 %vm3082_vm0, %v3083_v51  ;;  %v886_v59 = vadd.f32 %v3502_v31, %v3491_v5  ;;  %v2867_v31 = vpack.c.bf16 %v1429_v30, %v1428_v29 }
 0xa0d   :  { %2824 = vmatprep.subr.bf16.mxu1 %v3081_v0 }
 0xa10   :  { %2826 = vmatpush3.bf16.msra.mxu1 %v3446_v62 }
 0xa11   :  { %2827 = vmatprep.subr.bf16.mxu1 %v3081_v0 }
 0xa14   :  { %2829 = vmatpush3.bf16.msra.mxu1 %v3450_v2  ;;  %v1414_v2 = vld [vmem:[#allocation11] sm:$0xff] }
 0xa15   :  { %2830 = vmatprep.subr.bf16.mxu1 %v3081_v0 }
 0xa18   :  { %2832 = vmatpush3.bf16.msra.mxu1 %v3454_v7  ;;  %v2846_v7 = vpack.c.bf16 %v1415_v3, %v1414_v2 }
 0xa19   :  { %2833 = vmatprep.subr.bf16.mxu1 %v3081_v0 }
 0xa1c   :  { %2835 = vmatpush3.bf16.msra.mxu1 %v3458_v10  ;;  %v1418_v10 = vld [vmem:[#allocation11 + $0x20] sm:$0xff] }
 0xa1d   :  { %2836 = vmatprep.subr.bf16.mxu1 %v3081_v0  ;;  %v2852_v12 = vpack.c.bf16 %v1419_v11, %v1418_v10 }
 0xa20   :  { %2838 = vmatpush3.bf16.msra.mxu1 %v3462_v13  ;;  %v1420_v13 = vld [vmem:[#allocation11 + $0x30] sm:$0xff] }
 0xa21   :  { %2839 = vmatprep.subr.bf16.mxu1 %v3081_v0  ;;  %v2855_v15 = vpack.c.bf16 %v1421_v14, %v1420_v13 }
 0xa24   :  { %2841 = vmatpush3.bf16.msra.mxu1 %v3466_v17  ;;  %v1423_v17 = vld [vmem:[#allocation11 + $0x48] sm:$0xff] }
 0xa25   :  { %2842 = vmatprep.subr.bf16.mxu1 %v3081_v0 }
 0xa28   :  { %2844 = vmatpush3.bf16.msra.mxu1 %v3470_v21  ;;  %v1425_v21 = vld [vmem:[#allocation11 + $0x58] sm:$0xff] }
 0xa29   :  { %v2861_v22 = vpack.c.bf16 %v1425_v21, %v1424_v19 }
 0xade   :  { %v1267_v61 = vpop.f32.mrb[12].mxu1 }
 0xadf   :  { %v1268_v62 = vadd.f32 %v1267_v61, %v886_v59  ;;  %v2339_v63 = vpop.f32.mrb[13].mxu1 }
 0xae1   :  { %v1271_v1 = vmax.f32 %v1268_v62, 0.0 }
 0xae3   :  { %2373 = vmatmul.mubr.f32.vlgmr.msra.gmra.mrb[26].mxu0 %v1271_v1 }
 0xae4   :  { %2442 = vmatprep.mubr.msk.f32.mxu0 %vm3082_vm0, %v3083_v51  ;;  %2847 = vmatpush3.bf16.msra.mxu0 %v2846_v7  ;;  %v1422_v51 = vld [vmem:[#allocation11 + $0x40] sm:$0xff] }
 0xae5   :  { %2848 = vmatprep.subr.bf16.mxu0 %v3081_v0  ;;  %v2858_v18 = vpack.c.bf16 %v1423_v17, %v1422_v51 }
 0xae8   :  { %2850 = vmatpush3.bf16.msra.mxu0 %v2849_v9 }
 0xae9   :  { %2851 = vmatprep.subr.bf16.mxu0 %v3081_v0 }
 0xaec   :  { %2853 = vmatpush3.bf16.msra.mxu0 %v2852_v12 }
 0xaed   :  { %2854 = vmatprep.subr.bf16.mxu0 %v3081_v0 }
 0xaf0   :  { %2856 = vmatpush3.bf16.msra.mxu0 %v2855_v15 }
 0xaf1   :  { %2857 = vmatprep.subr.bf16.mxu0 %v3081_v0 }
 0xaf4   :  { %2859 = vmatpush3.bf16.msra.mxu0 %v2858_v18 }
 0xaf5   :  { %2860 = vmatprep.subr.bf16.mxu0 %v3081_v0 }
 0xaf8   :  { %2862 = vmatpush3.bf16.msra.mxu0 %v2861_v22 }
 0xaf9   :  { %2863 = vmatprep.subr.bf16.mxu0 %v3081_v0 }
 0xafc   :  { %2865 = vmatpush3.bf16.msra.mxu0 %v2864_v25 }
 0xafd   :  { %2866 = vmatprep.subr.bf16.mxu0 %v3081_v0  ;;  %v1528_v0 = vld [vmem:[#allocation13] ss:$0 sm:$0xff] }
 0xb00   :  { %2868 = vmatpush3.bf16.msra.mxu0 %v2867_v31 }
 0xbb6   :  { %v1338_v28 = vpop.f32.mrb[26].mxu0 }
 0xbb7   :  { %v1339_v16 = vadd.f32 %v1338_v28, %v891_v27  ;;  %v2374_v20 = vpop.f32.mrb[27].mxu0 }
 0xbb9   :  { %v1342_v26 = vmax.f32 %v1339_v16, 0.0 }
 0xbbb   :  { %2408 = vmatmul.mubr.f32.vlgmr.msra.gmra.mrb[14].mxu1 %v1342_v26 }
 0xc8e   :  { %v1409_v33 = vpop.f32.mrb[14].mxu1 }
 0xc8f   :  { %v1410_v34 = vadd.f32 %v1409_v33, %v896_v32  ;;  %v2409_v35 = vpop.f32.mrb[15].mxu1 }
 0xc91   :  { %v1413_v36 = vmax.f32 %v1410_v34, 0.0 }
 0xc93   :  { %2443 = vmatmul.mubr.f32.vlgmr.msra.gmra.mrb[28].mxu0 %v1413_v36 }
 0xd66   :  { %v1503_v37 = vpop.f32.mrb[28].mxu0 }
 0xd67   :  { %v1504_v38 = vadd.f32 %v1528_v0, %v1503_v37  ;;  %v2444_v39 = vpop.f32.mrb[29].mxu0 }
 0xd69   :  { %1507 = vst [vmem:[#allocation14] sm:$0xff] %v1504_v38 }
 0xd6a   :  { %3049 = shalt.err (!%p3046_p4)
}
 0xd6b   :  { %s3050_s17 = scalar_lea.hbm %s3640_s7, 128 }
 0xd6c   :  { %p3051_p5 = scmp.ne.s32.totalorder %s3640_s7, %s3050_s17  ;;  %p3054_p6 = scmp.lt.u32.totalorder %s3050_s17, %s3640_s7 }
 0xd6e   :  { %p3056_p7 = pnand %p3054_p6, %p3051_p5 }
 0xd70   :  { %3059 = shalt.err (!%p3056_p7)
}
 0xd71   :  { %1517 = dma.vmem_to_hbm [thread:$0]  %s1515_s3, 128, %s3640_s7, [#allocation4]  }
 0xd72   :  { %3068 = dma.done.wait [#allocation4], 128  }
 0xd73   :  { %3069 = vsyncadd [#allocation4], 4294967168 }
 0xd74   :  { %1521 = vsyncpa [#allocation3], 1 }
 0xd75   :  { %1522 = vsyncpa [#allocation6], 1 }
 0xd76   :  { %1523 = vsyncpa [#allocation9], 1 }
 0xd77   :  { %1524 = vsyncpa [#allocation12], 1 }
 0xd78   :  { %1525 = vsyncpa [#allocation4], 1 }

</bundles_post_ra>
